<compile_context>
chip_gen: v7x
topology: tpu7x:2x2x1
jax: 0.10.0
libtpu: 0.0.40
codegen_flags: <defaults>
</compile_context>

<pallas_src>
import functools

import jax
import jax.numpy as jnp
from jax.experimental import pallas as pl
from jax.experimental.pallas import tpu as pltpu


def _round_up(x, m):
    return (x + m - 1) // m * m


def _vmem_capacity_bytes():
    """Physical VMEM per core; falls back to the v7x worst case (64 MiB)."""
    try:
        return int(pltpu.get_tpu_info().vmem_capacity_bytes)
    except Exception:
        return 64 * 1024 * 1024


def _mlp_vmem_need(tm, ti, H, w_itemsize, x_itemsize):
    """Working-set model: double-buffered tiles + acc scratch + kernel intermediates."""
    return (
        2 * tm * H * x_itemsize            # activation tile (double-buffered)
        + 2 * H * 2 * ti * w_itemsize      # fused gate|up weight tile
        + 2 * ti * H * w_itemsize          # down-proj weight tile
        + 2 * tm * H * 4                   # output tile (worst case f32 partials)
        + tm * H * 4                       # f32 accumulator scratch
        + tm * 2 * ti * 4                  # gu intermediate (f32)
        + tm * ti * 4 + tm * ti * w_itemsize  # act f32 + cast copy
    )


def select_mlp_tiles(T, H, I, dtype):
    """Generation-aware (tm, ti) selection against the queried VMEM capacity."""
    itemsize = jnp.dtype(dtype).itemsize
    budget = int(_vmem_capacity_bytes() * 0.75)

    # Token tile: big for prefill (MXU roofline needs tm >~ 600 on v6e/v7x),
    # small-but-32-aligned for decode (safe bf16 sublane packing).
    if T >= 1024:
        tm = 1024
    elif T >= 512:
        tm = 512
    else:
        tm = _round_up(max(T, 1), 32)

    ti_cap = max(256, _round_up(I, 256))
    candidates = list(range(256, min(ti_cap, 2048) + 1, 256))
    ti = None
    while True:
        ti = None
        for t in candidates:                      # need() is monotone in t
            if _mlp_vmem_need(tm, t, H, itemsize, itemsize) <= budget:
                ti = t
        if ti is not None or tm <= 256:
            break
        tm //= 2                                   # shrink tm before giving up on ti
    if ti is None:
        ti = candidates[0]
    return tm, min(ti, ti_cap)


def _pick_tm(T, H, ti, itemsize):
    if T >= 1024:
        tm = 1024
    elif T >= 512:
        tm = 512
    else:
        tm = _round_up(max(T, 1), 32)
    budget = int(_vmem_capacity_bytes() * 0.75)
    while tm > 256 and _mlp_vmem_need(tm, ti, H, itemsize, itemsize) > budget:
        tm //= 2
    return tm


def prepare_mlp_weights(w_gate_up, w_down, *, ti):
    """One-time weight re-layout (do at weight-load time, NOT in the per-call path).

    w_gate_up: [2*I, H]  PyTorch [out, in]; first I rows = gate, last I rows = up.
    w_down   : [H, I]    PyTorch [out, in].
    Returns:
      w_gu : [nI, H, 2*ti]  fused gate|up, fully contiguous per I-tile (one linear DMA).
      w_dn : [Ipad, H]      transposed, zero-padded down-proj weight (row-tiled by ti).
    """
    # TODO(synk): int8 (v5e/v6e) / fp8 (v7x) weight compression for decode is not done here.
    assert ti % 128 == 0, "ti must be a multiple of 128 (prefer 256)"
    two_I, H = w_gate_up.shape
    I = two_I // 2
    Ipad = _round_up(I, ti)
    nI = Ipad // ti

    w_gate = w_gate_up[:I]
    w_up = w_gate_up[I:]
    if Ipad != I:
        pad = ((0, Ipad - I), (0, 0))
        w_gate = jnp.pad(w_gate, pad)
        w_up = jnp.pad(w_up, pad)

    wg = w_gate.reshape(nI, ti, H)
    wu = w_up.reshape(nI, ti, H)
    w_gu = jnp.transpose(jnp.concatenate([wg, wu], axis=1), (0, 2, 1))  # [nI, H, 2*ti]

    w_dn = w_down.T                                                     # [I, H]
    if Ipad != I:
        w_dn = jnp.pad(w_dn, ((0, Ipad - I), (0, 0)))
    return w_gu, w_dn


def _mlp_kernel(x_ref, wgu_ref, wd_ref, o_ref, acc_ref, *, ti):
    # x_ref:   [tm, H]         (native dtype)
    # wgu_ref: [1, H, 2*ti]    (gate columns | up columns for this I-tile)
    # wd_ref:  [ti, H]         (down-proj rows for this I-tile)
    # o_ref:   [1, tm, H]
    # acc_ref: [tm, H] f32 scratch accumulator (resident across the reduction axis)
    j = pl.program_id(2)
    is_first = j == 0
    is_last = j == pl.num_programs(2) - 1

    # One fused gate+up matmul on the MXU; f32 accumulation only.
    gu = jnp.dot(x_ref[...], wgu_ref[0], preferred_element_type=jnp.float32)
    gate = gu[:, :ti]
    up = gu[:, ti:]
    # SiluAndMul: silu(gate) * up, cast back to weight dtype for the second matmul.
    act = (gate * jax.nn.sigmoid(gate) * up).astype(wd_ref.dtype)
    partial = jnp.dot(act, wd_ref[...], preferred_element_type=jnp.float32)

    # No zero-fill; no extra acc store+readback on the last step.
    @pl.when(jnp.logical_and(is_first, is_last))
    def _single_step():
        o_ref[0] = partial.astype(o_ref.dtype)

    @pl.when(jnp.logical_and(is_first, jnp.logical_not(is_last)))
    def _first():
        acc_ref[...] = partial

    @pl.when(jnp.logical_and(jnp.logical_not(is_first), jnp.logical_not(is_last)))
    def _middle():
        acc_ref[...] += partial

    @pl.when(jnp.logical_and(jnp.logical_not(is_first), is_last))
    def _last():
        o_ref[0] = (acc_ref[...] + partial).astype(o_ref.dtype)


@functools.partial(jax.jit, static_argnames=("tm", "ti", "num_splits"))
def _mlp_call(x, w_gu, w_dn, *, tm, ti, num_splits):
    T, H = x.shape
    nI = w_gu.shape[0]
    assert w_gu.shape == (nI, H, 2 * ti)
    assert w_dn.shape == (nI * ti, H)

    Tp = _round_up(T, tm)
    if Tp != T:
        x = jnp.pad(x, ((0, Tp - T), (0, 0)))   # keep tail tokens instead of dropping

    # Optional split of the I reduction into independent partial sums
    # (leading "parallel" grid axis; lets v7x decode use both TensorCores).
    nsplit = num_splits if (num_splits > 1 and nI % num_splits == 0) else 1
    nIs = nI // nsplit
    out_dtype = jnp.float32 if nsplit > 1 else x.dtype

    grid = (nsplit, Tp // tm, nIs)

    w_itemsize = w_gu.dtype.itemsize
    x_itemsize = x.dtype.itemsize
    needed = _mlp_vmem_need(tm, ti, H, w_itemsize, x_itemsize)
    vmem_limit = min(int(_vmem_capacity_bytes() * 0.9),
                     max(needed * 3 // 2, 32 * 1024 * 1024))

    I_eff = nI * ti
    cost = pl.CostEstimate(
        flops=6 * Tp * I_eff * H,
        transcendentals=Tp * I_eff,
        bytes_accessed=3 * I_eff * H * w_itemsize + 2 * Tp * H * x_itemsize,
    )

    out = pl.pallas_call(
        functools.partial(_mlp_kernel, ti=ti),
        out_shape=jax.ShapeDtypeStruct((nsplit, Tp, H), out_dtype),
        grid_spec=pltpu.PrefetchScalarGridSpec(
            num_scalar_prefetch=0,
            grid=grid,
            in_specs=[
                # activation tile
                pl.BlockSpec((tm, H), lambda s, i, j: (i, 0)),
                # fused gate|up weight tile: contiguous per I-tile in HBM
                pl.BlockSpec((1, H, 2 * ti), lambda s, i, j: (s * nIs + j, 0, 0)),
                # down-proj weight tile
                pl.BlockSpec((ti, H), lambda s, i, j: (s * nIs + j, 0)),
            ],
            out_specs=pl.BlockSpec((1, tm, H), lambda s, i, j: (s, i, 0)),
            scratch_shapes=[pltpu.VMEM((tm, H), jnp.float32)],
        ),
        compiler_params=pltpu.CompilerParams(
            dimension_semantics=("parallel", "parallel", "arbitrary"),
            vmem_limit_bytes=vmem_limit,
        ),
        cost_estimate=cost,
    )(x, w_gu, w_dn)

    out = out[0] if nsplit == 1 else jnp.sum(out, axis=0)
    out = out.astype(x.dtype)
    return out[:T] if Tp != T else out


def minicpm3_mlp(x, w_gu, w_dn, *, ti, tm=None, num_splits=1):
    """MiniCPM3MLP forward. x: [T, H]; weights from prepare_mlp_weights(..., ti=ti)."""
    assert ti % 128 == 0, "ti must be a multiple of 128 (prefer 256)"
    if tm is None:
        tm = _pick_tm(x.shape[0], x.shape[1], ti, x.dtype.itemsize)
    return _mlp_call(x, w_gu, w_dn, tm=tm, ti=ti, num_splits=num_splits)


def _reference(x, w_gate_up, w_down):
    I = w_gate_up.shape[0] // 2
    xf = x.astype(jnp.float32)
    gate_up = xf @ w_gate_up.astype(jnp.float32).T
    gate, up = gate_up[:, :I], gate_up[:, I:]
    act = jax.nn.silu(gate) * up
    return act @ w_down.astype(jnp.float32).T


if __name__ == "__main__":
    # Small shapes consistent with the module: tokens=8, hidden=256, intermediate=512.
    T, H, I = 8, 256, 512

    key = jax.random.PRNGKey(0)
    kx, kgu, kd = jax.random.split(key, 3)

    x = jax.random.normal(kx, (T, H), dtype=jnp.float32)
    # PyTorch nn.Linear-style weight layout: [out_features, in_features]
    w_gate_up = jax.random.normal(kgu, (2 * I, H), dtype=jnp.float32) * 0.02
    w_down = jax.random.normal(kd, (H, I), dtype=jnp.float32) * 0.02

    ref = _reference(x, w_gate_up, w_down)

    # f32 check with auto (generation-aware) tile selection.
    tm, ti = select_mlp_tiles(T, H, I, jnp.float32)
    w_gu_f, w_dn_f = prepare_mlp_weights(w_gate_up, w_down, ti=ti)
    out = jax.block_until_ready(minicpm3_mlp(x, w_gu_f, w_dn_f, ti=ti, tm=tm))
    assert out.shape == (T, H)
    assert jnp.allclose(out, ref, atol=2e-4, rtol=2e-4), "f32 mismatch vs reference"

    # bf16 production path; ti=256 -> 2 I-tiles, reduction split into 2 partial sums
    # (the v7x dual-TensorCore decode pattern; runs fine sequentially elsewhere).
    xb = x.astype(jnp.bfloat16)
    w_gu_b, w_dn_b = prepare_mlp_weights(
        w_gate_up.astype(jnp.bfloat16), w_down.astype(jnp.bfloat16), ti=256)
    outb = jax.block_until_ready(
        minicpm3_mlp(xb, w_gu_b, w_dn_b, ti=256, num_splits=2))
    assert outb.shape == (T, H)
    assert jnp.allclose(outb.astype(jnp.float32), ref, atol=3e-2, rtol=3e-2), \
        "bf16 mismatch vs reference"

    print("KERNEL_OK")
</pallas_src>

<mosaic_0001>
module attributes {stable_mosaic.version = 11 : i64} {
  func.func @_mlp_kernel(%arg0: i32, %arg1: i32, %arg2: i32, %arg3: memref<32x256xf32, #tpu.memory_space<vmem>>, %arg4: memref<1x256x1024xf32, #tpu.memory_space<vmem>>, %arg5: memref<512x256xf32, #tpu.memory_space<vmem>>, %arg6: memref<1x32x256xf32, #tpu.memory_space<vmem>>, %arg7: memref<32x256xf32, #tpu.memory_space<vmem>>) attributes {dimension_semantics = [#tpu.dimension_semantics<parallel>, #tpu.dimension_semantics<parallel>, #tpu.dimension_semantics<arbitrary>], iteration_bounds = array<i64: 1, 1, 1>, scalar_prefetch = 0 : i64, scratch_operands = 1 : i64, tpu.core_type = #tpu.core_type<tc>, window_params = [{transform_indices = @transform_0, window_bounds = array<i64: 32, 256>}, {transform_indices = @transform_1, window_bounds = array<i64: 1, 256, 1024>}, {transform_indices = @transform_2, window_bounds = array<i64: 512, 256>}, {transform_indices = @transform_3, window_bounds = array<i64: 1, 32, 256>}]} {
    %c0_i32 = arith.constant 0 : i32
    %0 = arith.cmpi eq, %arg2, %c0_i32 : i32
    %c0_i32_0 = arith.constant 0 : i32
    %1 = arith.cmpi eq, %arg2, %c0_i32_0 : i32
    %c0 = arith.constant 0 : index
    %c0_1 = arith.constant 0 : index
    %2 = vector.load %arg3[%c0, %c0_1] : memref<32x256xf32, #tpu.memory_space<vmem>>, vector<32x256xf32>
    %c0_2 = arith.constant 0 : index
    %c0_3 = arith.constant 0 : index
    %c0_4 = arith.constant 0 : index
    %3 = vector.load %arg4[%c0_2, %c0_3, %c0_4] : memref<1x256x1024xf32, #tpu.memory_space<vmem>>, vector<1x256x1024xf32>
    %4 = vector.shape_cast %3 : vector<1x256x1024xf32> to vector<256x1024xf32>
    %cst = arith.constant dense<0.000000e+00> : vector<32x1024xf32>
    %5 = tpu.matmul %2, %4, %cst {dimension_numbers = #tpu.dot_dimension_numbers<[1], [0], [0], [1], [0, 0, 1, 1], [], []>} : vector<32x256xf32>, vector<256x1024xf32>, vector<32x1024xf32> -> vector<32x1024xf32>
    %6 = vector.extract_strided_slice %5 {offsets = [0, 0], sizes = [32, 512], strides = [1, 1]} : vector<32x1024xf32> to vector<32x512xf32>
    %7 = vector.extract_strided_slice %5 {offsets = [0, 512], sizes = [32, 512], strides = [1, 1]} : vector<32x1024xf32> to vector<32x512xf32>
    %8 = arith.negf %6 : vector<32x512xf32>
    %9 = math.exp %8 : vector<32x512xf32>
    %cst_5 = arith.constant 1.000000e+00 : f32
    %10 = vector.broadcast %cst_5 : f32 to vector<32x512xf32>
    %11 = arith.addf %10, %9 : vector<32x512xf32>
    %12 = arith.divf %10, %11 : vector<32x512xf32>
    %13 = arith.mulf %6, %12 : vector<32x512xf32>
    %14 = arith.mulf %13, %7 : vector<32x512xf32>
    %c0_6 = arith.constant 0 : index
    %c0_7 = arith.constant 0 : index
    %15 = vector.load %arg5[%c0_6, %c0_7] : memref<512x256xf32, #tpu.memory_space<vmem>>, vector<512x256xf32>
    %cst_8 = arith.constant dense<0.000000e+00> : vector<32x256xf32>
    %16 = tpu.matmul %14, %15, %cst_8 {dimension_numbers = #tpu.dot_dimension_numbers<[1], [0], [0], [1], [0, 0, 1, 1], [], []>} : vector<32x512xf32>, vector<512x256xf32>, vector<32x256xf32> -> vector<32x256xf32>
    %17 = arith.andi %0, %1 : i1
    %18 = arith.extui %17 : i1 to i32
    %c0_i32_9 = arith.constant 0 : i32
    %19 = arith.cmpi ne, %18, %c0_i32_9 : i32
    scf.if %19 {
      %c0_16 = arith.constant 0 : index
      %c0_17 = arith.constant 0 : index
      %c0_18 = arith.constant 0 : index
      %33 = vector.load %arg6[%c0_16, %c0_17, %c0_18] : memref<1x32x256xf32, #tpu.memory_space<vmem>>, vector<1x32x256xf32>
      %34 = vector.shape_cast %33 : vector<1x32x256xf32> to vector<32x256xf32>
      %35 = vector.shape_cast %16 : vector<32x256xf32> to vector<1x32x256xf32>
      tpu.vector_store %arg6[%c0_16, %c0_17, %c0_18], %35 {strides = array<i32>} : memref<1x32x256xf32, #tpu.memory_space<vmem>>, vector<1x32x256xf32>,
    } else {
    }
    %true = arith.constant true
    %20 = arith.xori %1, %true : i1
    %21 = arith.andi %0, %20 : i1
    %22 = arith.extui %21 : i1 to i32
    %c0_i32_10 = arith.constant 0 : i32
    %23 = arith.cmpi ne, %22, %c0_i32_10 : i32
    scf.if %23 {
      %c0_16 = arith.constant 0 : index
      %c0_17 = arith.constant 0 : index
      %33 = vector.load %arg7[%c0_16, %c0_17] : memref<32x256xf32, #tpu.memory_space<vmem>>, vector<32x256xf32>
      tpu.vector_store %arg7[%c0_16, %c0_17], %16 {strides = array<i32>} : memref<32x256xf32, #tpu.memory_space<vmem>>, vector<32x256xf32>,
    } else {
    }
    %true_11 = arith.constant true
    %24 = arith.xori %0, %true_11 : i1
    %true_12 = arith.constant true
    %25 = arith.xori %1, %true_12 : i1
    %26 = arith.andi %24, %25 : i1
    %27 = arith.extui %26 : i1 to i32
    %c0_i32_13 = arith.constant 0 : i32
    %28 = arith.cmpi ne, %27, %c0_i32_13 : i32
    scf.if %28 {
      %c0_16 = arith.constant 0 : index
      %c0_17 = arith.constant 0 : index
      %33 = vector.load %arg7[%c0_16, %c0_17] : memref<32x256xf32, #tpu.memory_space<vmem>>, vector<32x256xf32>
      %34 = arith.addf %33, %16 : vector<32x256xf32>
      %c0_18 = arith.constant 0 : index
      %c0_19 = arith.constant 0 : index
      %35 = vector.load %arg7[%c0_18, %c0_19] : memref<32x256xf32, #tpu.memory_space<vmem>>, vector<32x256xf32>
      tpu.vector_store %arg7[%c0_18, %c0_19], %34 {strides = array<i32>} : memref<32x256xf32, #tpu.memory_space<vmem>>, vector<32x256xf32>,
    } else {
    }
    %true_14 = arith.constant true
    %29 = arith.xori %0, %true_14 : i1
    %30 = arith.andi %29, %1 : i1
    %31 = arith.extui %30 : i1 to i32
    %c0_i32_15 = arith.constant 0 : i32
    %32 = arith.cmpi ne, %31, %c0_i32_15 : i32
    scf.if %32 {
      %c0_16 = arith.constant 0 : index
      %c0_17 = arith.constant 0 : index
      %33 = vector.load %arg7[%c0_16, %c0_17] : memref<32x256xf32, #tpu.memory_space<vmem>>, vector<32x256xf32>
      %34 = arith.addf %33, %16 : vector<32x256xf32>
      %c0_18 = arith.constant 0 : index
      %c0_19 = arith.constant 0 : index
      %c0_20 = arith.constant 0 : index
      %35 = vector.load %arg6[%c0_18, %c0_19, %c0_20] : memref<1x32x256xf32, #tpu.memory_space<vmem>>, vector<1x32x256xf32>
      %36 = vector.shape_cast %35 : vector<1x32x256xf32> to vector<32x256xf32>
      %37 = vector.shape_cast %34 : vector<32x256xf32> to vector<1x32x256xf32>
      tpu.vector_store %arg6[%c0_18, %c0_19, %c0_20], %37 {strides = array<i32>} : memref<1x32x256xf32, #tpu.memory_space<vmem>>, vector<1x32x256xf32>,
    } else {
    }
    return
  }
  func.func @transform_0(%arg0: i32, %arg1: i32, %arg2: i32) -> (i32, i32) {
    %c0_i32 = arith.constant 0 : i32
    %c0_i32_0 = arith.constant 0 : i32
    return %arg1, %c0_i32 : i32, i32
  }
  func.func @transform_1(%arg0: i32, %arg1: i32, %arg2: i32) -> (i32, i32, i32) {
    %c1_i32 = arith.constant 1 : i32
    %0 = arith.muli %arg0, %c1_i32 : i32
    %1 = arith.addi %0, %arg2 : i32
    %c0_i32 = arith.constant 0 : i32
    %c0_i32_0 = arith.constant 0 : i32
    %c0_i32_1 = arith.constant 0 : i32
    return %1, %c0_i32, %c0_i32_0 : i32, i32, i32
  }
  func.func @transform_2(%arg0: i32, %arg1: i32, %arg2: i32) -> (i32, i32) {
    %c1_i32 = arith.constant 1 : i32
    %0 = arith.muli %arg0, %c1_i32 : i32
    %1 = arith.addi %0, %arg2 : i32
    %c0_i32 = arith.constant 0 : i32
    %c0_i32_0 = arith.constant 0 : i32
    return %1, %c0_i32 : i32, i32
  }
  func.func @transform_3(%arg0: i32, %arg1: i32, %arg2: i32) -> (i32, i32, i32) {
    %c0_i32 = arith.constant 0 : i32
    %c0_i32_0 = arith.constant 0 : i32
    return %arg0, %arg1, %c0_i32 : i32, i32, i32
  }
}

</mosaic_0001>

<bundles_post_ra>
// kernel: _mlp_call.1
= control target key start
LH: loop header
LB: loop body
LE: loop exit
PB: predicated region body
PF: predicated region fallthrough
CT: control target
= control target key end

     0   :  { %8 = vsyncpa [#allocation4], 0  ;;  %s1922_s0 = inlined_call_operand.vmem [shape: f32[32,256], index: 0, kind: input, shape index: {}]   ;;  %s1923_s1 = inlined_call_operand.hbm [shape: f32[1,256,1024], index: 1, kind: input, shape index: {}]   ;;  %s1924_s2 = inlined_call_operand.hbm [shape: f32[512,256], index: 2, kind: input, shape index: {}]   ;;  %s1925_s3 = inlined_call_operand.vmem [shape: f32[1,32,256], index: 3, kind: output, shape index: {}]  }
   0x1   :  { %9 = vsyncpa [#allocation6], 0  ;;  %s1718_s12 = smov [#allocation3]   ;;  %s1670_s16 = scalar_lea.hbm %s1923_s1, 32768 }
   0x2   :  { %s21_s13 = sshll.u32 %s1718_s12, 4  ;;  %p1671_p0 = scmp.ne.s32.totalorder %s1923_s1, %s1670_s16  ;;  %s22_s13 = int_to_ptr.vmem [resolvable:$true] %s21_s13 }
   0x3   :  { %p1674_p1 = scmp.lt.u32.totalorder %s1670_s16, %s1923_s1 }
   0x5   :  { %p1676_p2 = pnand %p1674_p1, %p1671_p0 }
   0x7   :  { %1679 = shalt.err (!%p1676_p2)
}
   0x8   :  { %s1680_s21 = scalar_lea.vmem %s22_s13, 32768  ;;  %p1685_p4 = scmp.lt.s32.totalorder %s22_s13, %s22_s13 }
   0x9   :  { %p1681_p3 = scmp.ne.s32.totalorder %s22_s13, %s1680_s21  ;;  %p1686_p5 = scmp.lt.s32.totalorder %s1680_s21, %s1680_s21 }
   0xb   :  { %p1687_p6 = por %p1686_p5, %p1685_p4 }
   0xd   :  { %p1688_p7 = pnand %p1687_p6, %p1681_p3 }
   0xf   :  { %1691 = shalt.err (!%p1688_p7)
}
  0x10   :  { %s1719_s22 = smov 1024   ;;  %s1720_s23 = smov 64  }
  0x11   :  { %27 = dma.hbm_to_vmem [thread:$0]  %s1923_s1, 32768, %s22_s13, [#allocation4], %s1719_s22, %s1719_s22, %s1720_s23  }
  0x12   :  { %s1721_s26 = smov [#allocation5]   ;;  %s1692_s30 = scalar_lea.hbm %s1924_s2, 16384 }
  0x13   :  { %s38_s27 = sshll.u32 %s1721_s26, 4  ;;  %p1693_p8 = scmp.ne.s32.totalorder %s1924_s2, %s1692_s30  ;;  %s39_s27 = int_to_ptr.vmem [resolvable:$true] %s38_s27 }
  0x14   :  { %p1696_p9 = scmp.lt.u32.totalorder %s1692_s30, %s1924_s2 }
  0x16   :  { %p1698_p10 = pnand %p1696_p9, %p1693_p8 }
  0x18   :  { %1701 = shalt.err (!%p1698_p10)
}
  0x19   :  { %s1702_s8 = scalar_lea.vmem %s39_s27, 16384  ;;  %p1707_p12 = scmp.lt.s32.totalorder %s39_s27, %s39_s27 }
  0x1a   :  { %p1703_p11 = scmp.ne.s32.totalorder %s39_s27, %s1702_s8  ;;  %p1708_p13 = scmp.lt.s32.totalorder %s1702_s8, %s1702_s8 }
  0x1c   :  { %p1709_p0 = por %p1708_p13, %p1707_p12 }
  0x1e   :  { %p1710_p1 = pnand %p1709_p0, %p1703_p11 }
  0x20   :  { %1713 = shalt.err (!%p1710_p1)
}
  0x21   :  { %s1722_s1 = smov 256   ;;  %s1723_s9 = smov 16  }
  0x22   :  { %44 = dma.hbm_to_vmem [thread:$0]  %s1924_s2, 16384, %s39_s27, [#allocation6], %s1722_s1, %s1722_s1, %s1723_s9  }
  0x23   :  { %1714 = dma.done.wait [#allocation4], 32768  }
  0x24   :  { %1715 = vsyncadd [#allocation4], 4294934528 }
  0x25   :  { %1716 = dma.done.wait [#allocation6], 16384  }
  0x26   :  { %1717 = vsyncadd [#allocation6], 4294950912  ;;  %v64_v0 = vld [vmem:[#allocation3 + $0x8] sm:$0xff]  ;;  %v63_v2 = vld [vmem:[#allocation3] sm:$0xff] }
  0x27   :  { %v72_v1 = vld [vmem:[#allocation3 + $0x48] sm:$0xff]  ;;  %v71_v4 = vld [vmem:[#allocation3 + $0x40] sm:$0xff] }
  0x28   :  { %v1208_v3 = vpack.c.bf16 %v72_v1, %v64_v0  ;;  %v80_v5 = vld [vmem:[#allocation3 + $0x88] sm:$0xff]  ;;  %v1210_v7 = vpack.c.bf16 %v71_v4, %v63_v2  ;;  %v79_v9 = vld [vmem:[#allocation3 + $0x80] sm:$0xff] }
  0x29   :  { %v88_v6 = vld [vmem:[#allocation3 + $0xc8] sm:$0xff]  ;;  %v87_v10 = vld [vmem:[#allocation3 + $0xc0] sm:$0xff] }
  0x2a   :  { %v1212_v8 = vpack.c.bf16 %v88_v6, %v80_v5  ;;  %v96_v11 = vld [vmem:[#allocation3 + $0x108] sm:$0xff]  ;;  %1209 = vmatprep.subr.bf16.mxu1 %v1208_v3  ;;  %v1214_v13 = vpack.c.bf16 %v87_v10, %v79_v9  ;;  %v95_v15 = vld [vmem:[#allocation3 + $0x100] sm:$0xff] }
  0x2b   :  { %v104_v12 = vld [vmem:[#allocation3 + $0x148] sm:$0xff]  ;;  %1211 = vmatpush1.bf16.msra.mxu1 %v1210_v7  ;;  %v103_v16 = vld [vmem:[#allocation3 + $0x140] sm:$0xff] }
  0x2c   :  { %1213 = vmatprep.subr.bf16.mxu1 %v1212_v8  ;;  %v1216_v14 = vpack.c.bf16 %v104_v12, %v96_v11  ;;  %v112_v17 = vld [vmem:[#allocation3 + $0x188] sm:$0xff]  ;;  %v1218_v19 = vpack.c.bf16 %v103_v16, %v95_v15  ;;  %v111_v21 = vld [vmem:[#allocation3 + $0x180] sm:$0xff] }
  0x2d   :  { %v120_v18 = vld [vmem:[#allocation3 + $0x1c8] sm:$0xff]  ;;  %v119_v22 = vld [vmem:[#allocation3 + $0x1c0] sm:$0xff] }
  0x2e   :  { %v1220_v20 = vpack.c.bf16 %v120_v18, %v112_v17  ;;  %v128_v23 = vld [vmem:[#allocation3 + $0x208] sm:$0xff]  ;;  %v67_v28 = vld [vmem:[#allocation3 + $0x20] sm:$0xff]  ;;  %v1222_v30 = vpack.c.bf16 %v119_v22, %v111_v21 }
  0x2f   :  { %1215 = vmatpush1.bf16.msra.mxu1 %v1214_v13  ;;  %v136_v24 = vld [vmem:[#allocation3 + $0x248] sm:$0xff]  ;;  %v75_v29 = vld [vmem:[#allocation3 + $0x60] sm:$0xff] }
  0x30   :  { %1217 = vmatprep.subr.bf16.mxu1 %v1216_v14  ;;  %v68_v25 = vld [vmem:[#allocation3 + $0x28] sm:$0xff]  ;;  %v127_v31 = vld [vmem:[#allocation3 + $0x200] sm:$0xff]  ;;  %v1338_v32 = vpack.c.bf16 %v75_v29, %v67_v28  ;;  %v1224_v34 = vpack.c.bf16 %v136_v24, %v128_v23 }
  0x31   :  { %v76_v26 = vld [vmem:[#allocation3 + $0x68] sm:$0xff]  ;;  %v135_v35 = vld [vmem:[#allocation3 + $0x240] sm:$0xff] }
  0x32   :  { %v1336_v27 = vpack.c.bf16 %v76_v26, %v68_v25  ;;  %v84_v33 = vld [vmem:[#allocation3 + $0xa8] sm:$0xff]  ;;  %v83_v40 = vld [vmem:[#allocation3 + $0xa0] sm:$0xff]  ;;  %v1226_v45 = vpack.c.bf16 %v135_v35, %v127_v31 }
  0x33   :  { %1219 = vmatpush1.bf16.msra.mxu1 %v1218_v19  ;;  %v144_v36 = vld [vmem:[#allocation3 + $0x288] sm:$0xff]  ;;  %v91_v41 = vld [vmem:[#allocation3 + $0xe0] sm:$0xff] }
  0x34   :  { %1221 = vmatprep.subr.bf16.mxu1 %v1220_v20  ;;  %1337 = vmatprep.subr.bf16.mxu0 %v1336_v27  ;;  %v92_v37 = vld [vmem:[#allocation3 + $0xe8] sm:$0xff]  ;;  %v1342_v42 = vpack.c.bf16 %v91_v41, %v83_v40  ;;  %v143_v46 = vld [vmem:[#allocation3 + $0x280] sm:$0xff] }
  0x35   :  { %v152_v38 = vld [vmem:[#allocation3 + $0x2c8] sm:$0xff]  ;;  %1339 = vmatpush1.bf16.msra.mxu0 %v1338_v32  ;;  %v1340_v39 = vpack.c.bf16 %v92_v37, %v84_v33  ;;  %v99_v48 = vld [vmem:[#allocation3 + $0x120] sm:$0xff] }
  0x36   :  { %v100_v43 = vld [vmem:[#allocation3 + $0x128] sm:$0xff]  ;;  %v1228_v49 = vpack.c.bf16 %v152_v38, %v144_v36  ;;  %v151_v50 = vld [vmem:[#allocation3 + $0x2c0] sm:$0xff] }
  0x37   :  { %v108_v44 = vld [vmem:[#allocation3 + $0x168] sm:$0xff]  ;;  %1223 = vmatpush1.bf16.msra.mxu1 %v1222_v30  ;;  %1341 = vmatprep.subr.bf16.mxu0 %v1340_v39  ;;  %v107_v52 = vld [vmem:[#allocation3 + $0x160] sm:$0xff]  ;;  %v1230_v60 = vpack.c.bf16 %v151_v50, %v143_v46 }
  0x38   :  { %v1344_v47 = vpack.c.bf16 %v108_v44, %v100_v43  ;;  %1225 = vmatprep.subr.bf16.mxu1 %v1224_v34  ;;  %v160_v51 = vld [vmem:[#allocation3 + $0x308] sm:$0xff]  ;;  %v1346_v54 = vpack.c.bf16 %v107_v52, %v99_v48  ;;  %v115_v58 = vld [vmem:[#allocation3 + $0x1a0] sm:$0xff] }
  0x39   :  { %v168_v53 = vld [vmem:[#allocation3 + $0x348] sm:$0xff]  ;;  %1343 = vmatpush1.bf16.msra.mxu0 %v1342_v42  ;;  %v123_v59 = vld [vmem:[#allocation3 + $0x1e0] sm:$0xff] }
  0x3a   :  { %v116_v55 = vld [vmem:[#allocation3 + $0x1a8] sm:$0xff]  ;;  %1345 = vmatprep.subr.bf16.mxu0 %v1344_v47  ;;  %v1232_v62 = vpack.c.bf16 %v168_v53, %v160_v51  ;;  %v159_v63 = vld [vmem:[#allocation3 + $0x300] sm:$0xff]  ;;  %v1350_v4 = vpack.c.bf16 %v123_v59, %v115_v58 }
  0x3b   :  { %v124_v56 = vld [vmem:[#allocation3 + $0x1e8] sm:$0xff]  ;;  %1227 = vmatpush1.bf16.msra.mxu1 %v1226_v45  ;;  %v167_v0 = vld [vmem:[#allocation3 + $0x340] sm:$0xff] }
  0x3c   :  { %v1348_v57 = vpack.c.bf16 %v124_v56, %v116_v55  ;;  %v132_v61 = vld [vmem:[#allocation3 + $0x228] sm:$0xff]  ;;  %1229 = vmatprep.subr.bf16.mxu1 %v1228_v49  ;;  %v131_v6 = vld [vmem:[#allocation3 + $0x220] sm:$0xff]  ;;  %v1234_v8 = vpack.c.bf16 %v167_v0, %v159_v63 }
  0x3d   :  { %v140_v1 = vld [vmem:[#allocation3 + $0x268] sm:$0xff]  ;;  %1347 = vmatpush1.bf16.msra.mxu0 %v1346_v54  ;;  %v139_v7 = vld [vmem:[#allocation3 + $0x260] sm:$0xff] }
  0x3e   :  { %v176_v2 = vld [vmem:[#allocation3 + $0x388] sm:$0xff]  ;;  %1349 = vmatprep.subr.bf16.mxu0 %v1348_v57  ;;  %v1352_v5 = vpack.c.bf16 %v140_v1, %v132_v61  ;;  %v175_v12 = vld [vmem:[#allocation3 + $0x380] sm:$0xff]  ;;  %v1354_v16 = vpack.c.bf16 %v139_v7, %v131_v6 }
  0x3f   :  { %v184_v3 = vld [vmem:[#allocation3 + $0x3c8] sm:$0xff]  ;;  %1231 = vmatpush1.bf16.msra.mxu1 %v1230_v60  ;;  %v183_v13 = vld [vmem:[#allocation3 + $0x3c0] sm:$0xff] }
  0x40   :  { %v148_v9 = vld [vmem:[#allocation3 + $0x2a8] sm:$0xff]  ;;  %1233 = vmatprep.subr.bf16.mxu1 %v1232_v62  ;;  %v1236_v11 = vpack.c.bf16 %v184_v3, %v176_v2  ;;  %v147_v18 = vld [vmem:[#allocation3 + $0x2a0] sm:$0xff]  ;;  %v1238_v20 = vpack.c.bf16 %v183_v13, %v175_v12 }
  0x41   :  { %v156_v10 = vld [vmem:[#allocation3 + $0x2e8] sm:$0xff]  ;;  %1351 = vmatpush1.bf16.msra.mxu0 %v1350_v4  ;;  %v155_v19 = vld [vmem:[#allocation3 + $0x2e0] sm:$0xff] }
  0x42   :  { %v192_v14 = vld [vmem:[#allocation3 + $0x408] sm:$0xff]  ;;  %1353 = vmatprep.subr.bf16.mxu0 %v1352_v5  ;;  %v1356_v17 = vpack.c.bf16 %v156_v10, %v148_v9  ;;  %v191_v24 = vld [vmem:[#allocation3 + $0x400] sm:$0xff]  ;;  %v1358_v28 = vpack.c.bf16 %v155_v19, %v147_v18 }
  0x43   :  { %v200_v15 = vld [vmem:[#allocation3 + $0x448] sm:$0xff]  ;;  %1235 = vmatpush1.bf16.msra.mxu1 %v1234_v8  ;;  %v199_v25 = vld [vmem:[#allocation3 + $0x440] sm:$0xff] }
  0x44   :  { %v164_v21 = vld [vmem:[#allocation3 + $0x328] sm:$0xff]  ;;  %1237 = vmatprep.subr.bf16.mxu1 %v1236_v11  ;;  %v1240_v23 = vpack.c.bf16 %v200_v15, %v192_v14  ;;  %v163_v30 = vld [vmem:[#allocation3 + $0x320] sm:$0xff]  ;;  %v1242_v32 = vpack.c.bf16 %v199_v25, %v191_v24 }
  0x45   :  { %v172_v22 = vld [vmem:[#allocation3 + $0x368] sm:$0xff]  ;;  %1355 = vmatpush1.bf16.msra.mxu0 %v1354_v16  ;;  %v171_v31 = vld [vmem:[#allocation3 + $0x360] sm:$0xff] }
  0x46   :  { %v208_v26 = vld [vmem:[#allocation3 + $0x488] sm:$0xff]  ;;  %1357 = vmatprep.subr.bf16.mxu0 %v1356_v17  ;;  %v1360_v29 = vpack.c.bf16 %v172_v22, %v164_v21  ;;  %v207_v36 = vld [vmem:[#allocation3 + $0x480] sm:$0xff]  ;;  %v1362_v41 = vpack.c.bf16 %v171_v31, %v163_v30 }
  0x47   :  { %v216_v27 = vld [vmem:[#allocation3 + $0x4c8] sm:$0xff]  ;;  %1239 = vmatpush1.bf16.msra.mxu1 %v1238_v20  ;;  %v215_v37 = vld [vmem:[#allocation3 + $0x4c0] sm:$0xff] }
  0x48   :  { %v180_v33 = vld [vmem:[#allocation3 + $0x3a8] sm:$0xff]  ;;  %1241 = vmatprep.subr.bf16.mxu1 %v1240_v23  ;;  %v1244_v35 = vpack.c.bf16 %v216_v27, %v208_v26  ;;  %v179_v43 = vld [vmem:[#allocation3 + $0x3a0] sm:$0xff]  ;;  %v1246_v45 = vpack.c.bf16 %v215_v37, %v207_v36 }
  0x49   :  { %v188_v34 = vld [vmem:[#allocation3 + $0x3e8] sm:$0xff]  ;;  %1359 = vmatpush1.bf16.msra.mxu0 %v1358_v28  ;;  %v187_v44 = vld [vmem:[#allocation3 + $0x3e0] sm:$0xff] }
  0x4a   :  { %v1771_v38 = vld [vmem:[%s1922_s0 + $0x8] sm:$0xff]  ;;  %1361 = vmatprep.subr.bf16.mxu0 %v1360_v29  ;;  %v1364_v42 = vpack.c.bf16 %v188_v34, %v180_v33  ;;  %v223_v49 = vld [vmem:[#allocation3 + $0x500] sm:$0xff]  ;;  %v1366_v53 = vpack.c.bf16 %v187_v44, %v179_v43 }
  0x4b   :  { %v224_v39 = vld [vmem:[#allocation3 + $0x508] sm:$0xff]  ;;  %383 = vmatprep.mubr.f32.mxu1 %v1771_v38  ;;  %561 = vmatprep.mubr.f32.mxu0 %v1771_v38  ;;  %v231_v50 = vld [vmem:[#allocation3 + $0x540] sm:$0xff] }
  0x4c   :  { %v232_v40 = vld [vmem:[#allocation3 + $0x548] sm:$0xff]  ;;  %1243 = vmatpush1.bf16.msra.mxu1 %v1242_v32  ;;  %v195_v55 = vld [vmem:[#allocation3 + $0x420] sm:$0xff]  ;;  %v1250_v57 = vpack.c.bf16 %v231_v50, %v223_v49  ;;  %v74_v49 = vld [vmem:[#allocation3 + $0x58] sm:$0xff] }
  0x4d   :  { %v196_v46 = vld [vmem:[#allocation3 + $0x428] sm:$0xff]  ;;  %1245 = vmatprep.subr.bf16.mxu1 %v1244_v35  ;;  %v1248_v48 = vpack.c.bf16 %v232_v40, %v224_v39  ;;  %1363 = vmatpush1.bf16.msra.mxu0 %v1362_v41  ;;  %v203_v56 = vld [vmem:[#allocation3 + $0x460] sm:$0xff] }
  0x4e   :  { %v204_v47 = vld [vmem:[#allocation3 + $0x468] sm:$0xff]  ;;  %1365 = vmatprep.subr.bf16.mxu0 %v1364_v42  ;;  %v239_v61 = vld [vmem:[#allocation3 + $0x580] sm:$0xff]  ;;  %v1370_v1 = vpack.c.bf16 %v203_v56, %v195_v55 }
  0x4f   :  { %v240_v51 = vld [vmem:[#allocation3 + $0x588] sm:$0xff]  ;;  %v1368_v54 = vpack.c.bf16 %v204_v47, %v196_v46  ;;  %v247_v62 = vld [vmem:[#allocation3 + $0x5c0] sm:$0xff] }
  0x50   :  { %v248_v52 = vld [vmem:[#allocation3 + $0x5c8] sm:$0xff]  ;;  %1247 = vmatpush1.bf16.msra.mxu1 %v1246_v45  ;;  %v211_v3 = vld [vmem:[#allocation3 + $0x4a0] sm:$0xff]  ;;  %v1254_v5 = vpack.c.bf16 %v247_v62, %v239_v61  ;;  %v90_v61 = vld [vmem:[#allocation3 + $0xd8] sm:$0xff] }
  0x51   :  { %v212_v58 = vld [vmem:[#allocation3 + $0x4a8] sm:$0xff]  ;;  %1249 = vmatprep.subr.bf16.mxu1 %v1248_v48  ;;  %v1252_v60 = vpack.c.bf16 %v248_v52, %v240_v51  ;;  %1367 = vmatpush1.bf16.msra.mxu0 %v1366_v53  ;;  %v219_v4 = vld [vmem:[#allocation3 + $0x4e0] sm:$0xff]  ;;  %v66_v48 = vld [vmem:[#allocation3 + $0x18] sm:$0xff] }
  0x52   :  { %v220_v59 = vld [vmem:[#allocation3 + $0x4e8] sm:$0xff]  ;;  %1369 = vmatprep.subr.bf16.mxu0 %v1368_v54  ;;  %v255_v9 = vld [vmem:[#allocation3 + $0x600] sm:$0xff]  ;;  %v1374_v13 = vpack.c.bf16 %v219_v4, %v211_v3 }
  0x53   :  { %v256_v63 = vld [vmem:[#allocation3 + $0x608] sm:$0xff]  ;;  %v1372_v2 = vpack.c.bf16 %v220_v59, %v212_v58  ;;  %v263_v10 = vld [vmem:[#allocation3 + $0x640] sm:$0xff]  ;;  %v65_v58 = vld [vmem:[#allocation3 + $0x10] sm:$0xff] }
  0x54   :  { %v264_v0 = vld [vmem:[#allocation3 + $0x648] sm:$0xff]  ;;  %1251 = vmatpush1.bf16.msra.mxu1 %v1250_v57  ;;  %v227_v15 = vld [vmem:[#allocation3 + $0x520] sm:$0xff]  ;;  %v1258_v17 = vpack.c.bf16 %v263_v10, %v255_v9  ;;  %v1272_v57 = vpack.c.bf16 %v74_v49, %v66_v48  ;;  %v73_v59 = vld [vmem:[#allocation3 + $0x50] sm:$0xff] }
  0x55   :  { %v228_v6 = vld [vmem:[#allocation3 + $0x528] sm:$0xff]  ;;  %1253 = vmatprep.subr.bf16.mxu1 %v1252_v60  ;;  %v1256_v8 = vpack.c.bf16 %v264_v0, %v256_v63  ;;  %1371 = vmatpush1.bf16.msra.mxu0 %v1370_v1  ;;  %v235_v16 = vld [vmem:[#allocation3 + $0x560] sm:$0xff]  ;;  %v82_v60 = vld [vmem:[#allocation3 + $0x98] sm:$0xff]  ;;  %v1274_v3 = vpack.c.bf16 %v73_v59, %v65_v58 }
  0x56   :  { %v236_v7 = vld [vmem:[#allocation3 + $0x568] sm:$0xff]  ;;  %1373 = vmatprep.subr.bf16.mxu0 %v1372_v2  ;;  %v271_v21 = vld [vmem:[#allocation3 + $0x680] sm:$0xff]  ;;  %v1378_v25 = vpack.c.bf16 %v235_v16, %v227_v15  ;;  %v1783_v9 = vld [vmem:[%s1922_s0 + $0x18] sm:$0xff] }
  0x57   :  { %v272_v11 = vld [vmem:[#allocation3 + $0x688] sm:$0xff]  ;;  %v1376_v14 = vpack.c.bf16 %v236_v7, %v228_v6  ;;  %v279_v22 = vld [vmem:[#allocation3 + $0x6c0] sm:$0xff]  ;;  %v1276_v6 = vpack.c.bf16 %v90_v61, %v82_v60  ;;  %v81_v7 = vld [vmem:[#allocation3 + $0x90] sm:$0xff] }
  0x58   :  { %v280_v12 = vld [vmem:[#allocation3 + $0x6c8] sm:$0xff]  ;;  %1255 = vmatpush1.bf16.msra.mxu1 %v1254_v5  ;;  %v243_v27 = vld [vmem:[#allocation3 + $0x5a0] sm:$0xff]  ;;  %v1262_v29 = vpack.c.bf16 %v279_v22, %v271_v21  ;;  %v98_v10 = vld [vmem:[#allocation3 + $0x118] sm:$0xff] }
  0x59   :  { %v244_v18 = vld [vmem:[#allocation3 + $0x5a8] sm:$0xff]  ;;  %1257 = vmatprep.subr.bf16.mxu1 %v1256_v8  ;;  %v1260_v20 = vpack.c.bf16 %v280_v12, %v272_v11  ;;  %1375 = vmatpush1.bf16.msra.mxu0 %v1374_v13  ;;  %v251_v28 = vld [vmem:[#allocation3 + $0x5e0] sm:$0xff]  ;;  %v89_v8 = vld [vmem:[#allocation3 + $0xd0] sm:$0xff] }
  0x5a   :  { %v252_v19 = vld [vmem:[#allocation3 + $0x5e8] sm:$0xff]  ;;  %1377 = vmatprep.subr.bf16.mxu0 %v1376_v14  ;;  %v287_v33 = vld [vmem:[#allocation3 + $0x700] sm:$0xff]  ;;  %v1382_v37 = vpack.c.bf16 %v251_v28, %v243_v27  ;;  %v106_v11 = vld [vmem:[#allocation3 + $0x158] sm:$0xff]  ;;  %v1278_v16 = vpack.c.bf16 %v89_v8, %v81_v7 }
  0x5b   :  { %v288_v23 = vld [vmem:[#allocation3 + $0x708] sm:$0xff]  ;;  %v1380_v26 = vpack.c.bf16 %v252_v19, %v244_v18  ;;  %v295_v34 = vld [vmem:[#allocation3 + $0x740] sm:$0xff]  ;;  %v1280_v18 = vpack.c.bf16 %v106_v11, %v98_v10  ;;  %v97_v19 = vld [vmem:[#allocation3 + $0x110] sm:$0xff] }
  0x5c   :  { %v296_v24 = vld [vmem:[#allocation3 + $0x748] sm:$0xff]  ;;  %1259 = vmatpush1.bf16.msra.mxu1 %v1258_v17  ;;  %v259_v40 = vld [vmem:[#allocation3 + $0x620] sm:$0xff]  ;;  %v1266_v42 = vpack.c.bf16 %v295_v34, %v287_v33  ;;  %v1790_v17 = vld [vmem:[%s1922_s0 + $0x10] sm:$0xff] }
  0x5d   :  { %v260_v30 = vld [vmem:[#allocation3 + $0x628] sm:$0xff]  ;;  %1261 = vmatprep.subr.bf16.mxu1 %v1260_v20  ;;  %v1264_v32 = vpack.c.bf16 %v296_v24, %v288_v23  ;;  %1379 = vmatpush1.bf16.msra.mxu0 %v1378_v25  ;;  %v267_v41 = vld [vmem:[#allocation3 + $0x660] sm:$0xff]  ;;  %v105_v20 = vld [vmem:[#allocation3 + $0x150] sm:$0xff] }
  0x5e   :  { %v268_v31 = vld [vmem:[#allocation3 + $0x668] sm:$0xff]  ;;  %1381 = vmatprep.subr.bf16.mxu0 %v1380_v26  ;;  %v303_v46 = vld [vmem:[#allocation3 + $0x780] sm:$0xff]  ;;  %v1386_v50 = vpack.c.bf16 %v267_v41, %v259_v40  ;;  %v114_v22 = vld [vmem:[#allocation3 + $0x198] sm:$0xff]  ;;  %v1282_v25 = vpack.c.bf16 %v105_v20, %v97_v19 }
  0x5f   :  { %v304_v35 = vld [vmem:[#allocation3 + $0x788] sm:$0xff]  ;;  %v1384_v39 = vpack.c.bf16 %v268_v31, %v260_v30  ;;  %v311_v47 = vld [vmem:[#allocation3 + $0x7c0] sm:$0xff]  ;;  %v122_v23 = vld [vmem:[#allocation3 + $0x1d8] sm:$0xff] }
  0x60   :  { %v312_v36 = vld [vmem:[#allocation3 + $0x7c8] sm:$0xff]  ;;  %1263 = vmatpush1.bf16.msra.mxu1 %v1262_v29  ;;  %v275_v52 = vld [vmem:[#allocation3 + $0x6a0] sm:$0xff]  ;;  %v1270_v54 = vpack.c.bf16 %v311_v47, %v303_v46  ;;  %v1284_v27 = vpack.c.bf16 %v122_v23, %v114_v22  ;;  %v113_v28 = vld [vmem:[#allocation3 + $0x190] sm:$0xff] }
  0x61   :  { %v276_v43 = vld [vmem:[#allocation3 + $0x6a8] sm:$0xff]  ;;  %1265 = vmatprep.subr.bf16.mxu1 %v1264_v32  ;;  %v1268_v45 = vpack.c.bf16 %v312_v36, %v304_v35  ;;  %1383 = vmatpush1.bf16.msra.mxu0 %v1382_v37  ;;  %v283_v53 = vld [vmem:[#allocation3 + $0x6e0] sm:$0xff]  ;;  %v121_v29 = vld [vmem:[#allocation3 + $0x1d0] sm:$0xff] }
  0x62   :  { %v284_v44 = vld [vmem:[#allocation3 + $0x6e8] sm:$0xff]  ;;  %1385 = vmatprep.subr.bf16.mxu0 %v1384_v39  ;;  %v1390_v62 = vpack.c.bf16 %v283_v53, %v275_v52  ;;  %v291_v0 = vld [vmem:[#allocation3 + $0x720] sm:$0xff]  ;;  %v1807_v30 = vld [vmem:[%s1922_s0 + $0x38] sm:$0xff]  ;;  %v1286_v33 = vpack.c.bf16 %v121_v29, %v113_v28 }
  0x63   :  { %v1388_v51 = vpack.c.bf16 %v284_v44, %v276_v43  ;;  %v292_v55 = vld [vmem:[#allocation3 + $0x728] sm:$0xff]  ;;  %v299_v1 = vld [vmem:[#allocation3 + $0x760] sm:$0xff]  ;;  %v130_v31 = vld [vmem:[#allocation3 + $0x218] sm:$0xff] }
  0x64   :  { %1267 = vmatpush1.bf16.msra.mxu1 %v1266_v42  ;;  %v300_v56 = vld [vmem:[#allocation3 + $0x768] sm:$0xff]  ;;  %v1778_v2 = vld [vmem:[%s1922_s0] sm:$0xff]  ;;  %v1394_v12 = vpack.c.bf16 %v299_v1, %v291_v0  ;;  %v138_v32 = vld [vmem:[#allocation3 + $0x258] sm:$0xff] }
  0x65   :  { %1269 = vmatprep.subr.bf16.mxu1 %v1268_v45  ;;  %1387 = vmatpush1.bf16.msra.mxu0 %v1386_v50  ;;  %v1392_v63 = vpack.c.bf16 %v300_v56, %v292_v55  ;;  %v308_v4 = vld [vmem:[#allocation3 + $0x7a8] sm:$0xff]  ;;  %v307_v14 = vld [vmem:[#allocation3 + $0x7a0] sm:$0xff]  ;;  %v1814_v34 = vld [vmem:[%s1922_s0 + $0x30] sm:$0xff]  ;;  %v1288_v35 = vpack.c.bf16 %v138_v32, %v130_v31 }
  0x66   :  { %1389 = vmatprep.subr.bf16.mxu0 %v1388_v51  ;;  %v316_v5 = vld [vmem:[#allocation3 + $0x7e8] sm:$0xff]  ;;  %v315_v15 = vld [vmem:[#allocation3 + $0x7e0] sm:$0xff]  ;;  %v129_v36 = vld [vmem:[#allocation3 + $0x210] sm:$0xff] }
  0x67   :  { %v1396_v13 = vpack.c.bf16 %v316_v5, %v308_v4  ;;  %v1795_v21 = vld [vmem:[%s1922_s0 + $0x28] sm:$0xff]  ;;  %v1398_v24 = vpack.c.bf16 %v315_v15, %v307_v14  ;;  %v1802_v26 = vld [vmem:[%s1922_s0 + $0x20] sm:$0xff]  ;;  %v137_v37 = vld [vmem:[#allocation3 + $0x250] sm:$0xff] }
  0x68   :  { %1271 = vmatpush1.bf16.msra.mxu1 %v1270_v54  ;;  %v146_v39 = vld [vmem:[#allocation3 + $0x298] sm:$0xff]  ;;  %v1290_v41 = vpack.c.bf16 %v137_v37, %v129_v36  ;;  %v145_v43 = vld [vmem:[#allocation3 + $0x290] sm:$0xff]  ;;  %v804_v58 = vld [vmem:[#allocation5 + $0x8] sm:$0xff] }
  0x69   :  { %1273 = vmatprep.subr.bf16.mxu1 %v1272_v57  ;;  %1391 = vmatpush1.bf16.msra.mxu0 %v1390_v62  ;;  %v154_v40 = vld [vmem:[#allocation3 + $0x2d8] sm:$0xff]  ;;  %v153_v44 = vld [vmem:[#allocation3 + $0x2d0] sm:$0xff]  ;;  %v803_v60 = vld [vmem:[#allocation5] sm:$0xff] }
  0x6a   :  { %1393 = vmatprep.subr.bf16.mxu0 %v1392_v63  ;;  %v1292_v42 = vpack.c.bf16 %v154_v40, %v146_v39  ;;  %v162_v45 = vld [vmem:[#allocation3 + $0x318] sm:$0xff]  ;;  %v1294_v47 = vpack.c.bf16 %v153_v44, %v145_v43  ;;  %v161_v49 = vld [vmem:[#allocation3 + $0x310] sm:$0xff]  ;;  %v808_v0 = vld [vmem:[#allocation5 + $0x28] sm:$0xff] }
  0x6b   :  { %384 = vmatmul.mubr.f32.vlgmr.msra.gmra.mrb[0].mxu1 %v1778_v2  ;;  %v170_v46 = vld [vmem:[#allocation3 + $0x358] sm:$0xff]  ;;  %v169_v50 = vld [vmem:[#allocation3 + $0x350] sm:$0xff]  ;;  %v807_v5 = vld [vmem:[#allocation5 + $0x20] sm:$0xff] }
  0x6c   :  { %1275 = vmatpush1.bf16.msra.mxu1 %v1274_v3  ;;  %389 = vmatprep.mubr.f32.mxu1 %v1783_v9  ;;  %v1296_v48 = vpack.c.bf16 %v170_v46, %v162_v45  ;;  %v178_v51 = vld [vmem:[#allocation3 + $0x398] sm:$0xff]  ;;  %v177_v53 = vld [vmem:[#allocation3 + $0x390] sm:$0xff]  ;;  %v1298_v55 = vpack.c.bf16 %v169_v50, %v161_v49  ;;  %v812_v7 = vld [vmem:[#allocation5 + $0x48] sm:$0xff] }
  0x6d   :  { %1277 = vmatprep.subr.bf16.mxu1 %v1276_v6  ;;  %1395 = vmatpush1.bf16.msra.mxu0 %v1394_v12  ;;  %v186_v52 = vld [vmem:[#allocation3 + $0x3d8] sm:$0xff]  ;;  %v185_v54 = vld [vmem:[#allocation3 + $0x3d0] sm:$0xff]  ;;  %v816_v22 = vld [vmem:[#allocation5 + $0x68] sm:$0xff] }
  0x6e   :  { %1397 = vmatprep.subr.bf16.mxu0 %v1396_v13  ;;  %v194_v56 = vld [vmem:[#allocation3 + $0x418] sm:$0xff]  ;;  %v1300_v61 = vpack.c.bf16 %v186_v52, %v178_v51  ;;  %v805_v63 = vld [vmem:[#allocation5 + $0x10] sm:$0xff]  ;;  %v1302_v10 = vpack.c.bf16 %v185_v54, %v177_v53  ;;  %v820_v37 = vld [vmem:[#allocation5 + $0x88] sm:$0xff] }
  0x6f   :  { %390 = vmatmul.mubr.f32.gmra.mrb[2].mxu1 %v1790_v17  ;;  %v202_v57 = vld [vmem:[#allocation3 + $0x458] sm:$0xff]  ;;  %v1466_v3 = vpack.c.bf16 %v805_v63, %v803_v60  ;;  %v809_v6 = vld [vmem:[#allocation5 + $0x30] sm:$0xff]  ;;  %v824_v50 = vld [vmem:[#allocation5 + $0xa8] sm:$0xff] }
  0x70   :  { %1279 = vmatpush1.bf16.msra.mxu1 %v1278_v16  ;;  %395 = vmatprep.mubr.f32.mxu1 %v1795_v21  ;;  %v806_v59 = vld [vmem:[#allocation5 + $0x18] sm:$0xff]  ;;  %v193_v11 = vld [vmem:[#allocation3 + $0x410] sm:$0xff]  ;;  %v1470_v13 = vpack.c.bf16 %v809_v6, %v807_v5  ;;  %v1304_v14 = vpack.c.bf16 %v202_v57, %v194_v56 }
  0x71   :  { %1281 = vmatprep.subr.bf16.mxu1 %v1280_v18  ;;  %1399 = vmatpush1.bf16.msra.mxu0 %v1398_v24  ;;  %v1464_v62 = vpack.c.bf16 %v806_v59, %v804_v58  ;;  %v810_v1 = vld [vmem:[#allocation5 + $0x38] sm:$0xff]  ;;  %v201_v12 = vld [vmem:[#allocation3 + $0x450] sm:$0xff]  ;;  %v811_v18 = vld [vmem:[#allocation5 + $0x40] sm:$0xff] }
  0x72   :  { %v1468_v4 = vpack.c.bf16 %v810_v1, %v808_v0  ;;  %v814_v8 = vld [vmem:[#allocation5 + $0x58] sm:$0xff]  ;;  %v813_v19 = vld [vmem:[#allocation5 + $0x50] sm:$0xff]  ;;  %v1306_v24 = vpack.c.bf16 %v201_v12, %v193_v11  ;;  %v823_v59 = vld [vmem:[#allocation5 + $0xa0] sm:$0xff] }
  0x73   :  { %396 = vmatmul.mubr.f32.gmra.mrb[4].mxu1 %v1802_v26  ;;  %1465 = vmatprep.subr.bf16.mxu0 %v1464_v62  ;;  %v210_v15 = vld [vmem:[#allocation3 + $0x498] sm:$0xff]  ;;  %v1472_v16 = vpack.c.bf16 %v814_v8, %v812_v7  ;;  %v1474_v28 = vpack.c.bf16 %v813_v19, %v811_v18  ;;  %v241_v53 = vld [vmem:[#allocation3 + $0x590] sm:$0xff]  ;;  %v828_v62 = vld [vmem:[#allocation5 + $0xc8] sm:$0xff] }
  0x74   :  { %1283 = vmatpush1.bf16.msra.mxu1 %v1282_v25  ;;  %401 = vmatprep.mubr.f32.mxu1 %v1807_v30  ;;  %v218_v20 = vld [vmem:[#allocation3 + $0x4d8] sm:$0xff]  ;;  %v209_v25 = vld [vmem:[#allocation3 + $0x490] sm:$0xff]  ;;  %v827_v8 = vld [vmem:[#allocation5 + $0xc0] sm:$0xff] }
  0x75   :  { %1285 = vmatprep.subr.bf16.mxu1 %v1284_v27  ;;  %562 = vmatmul.mubr.f32.vlgmr.msra.gmra.mrb[0].mxu0 %v1778_v2  ;;  %v818_v23 = vld [vmem:[#allocation5 + $0x78] sm:$0xff]  ;;  %v217_v27 = vld [vmem:[#allocation3 + $0x4d0] sm:$0xff]  ;;  %v1308_v29 = vpack.c.bf16 %v218_v20, %v210_v15  ;;  %v832_v12 = vld [vmem:[#allocation5 + $0xe8] sm:$0xff] }
  0x76   :  { %567 = vmatprep.mubr.f32.mxu0 %v1783_v9  ;;  %1467 = vmatpush1.bf16.msra.mxu0 %v1466_v3  ;;  %v226_v31 = vld [vmem:[#allocation3 + $0x518] sm:$0xff]  ;;  %v1476_v32 = vpack.c.bf16 %v818_v23, %v816_v22  ;;  %v1310_v40 = vpack.c.bf16 %v217_v27, %v209_v25  ;;  %v249_v54 = vld [vmem:[#allocation3 + $0x5d0] sm:$0xff]  ;;  %v831_v22 = vld [vmem:[#allocation5 + $0xe0] sm:$0xff] }
  0x77   :  { %402 = vmatmul.mubr.f32.gmra.mrb[6].mxu1 %v1814_v34  ;;  %1469 = vmatprep.subr.bf16.mxu0 %v1468_v4  ;;  %v234_v36 = vld [vmem:[#allocation3 + $0x558] sm:$0xff]  ;;  %v825_v60 = vld [vmem:[#allocation5 + $0xb0] sm:$0xff]  ;;  %v1318_v0 = vpack.c.bf16 %v249_v54, %v241_v53 }
  0x78   :  { %1287 = vmatpush1.bf16.msra.mxu1 %v1286_v33  ;;  %472 = vmatprep.mubr.f32.mxu1 %v1771_v38  ;;  %v815_v33 = vld [vmem:[#allocation5 + $0x60] sm:$0xff]  ;;  %v822_v39 = vld [vmem:[#allocation5 + $0x98] sm:$0xff]  ;;  %v1312_v44 = vpack.c.bf16 %v234_v36, %v226_v31  ;;  %v257_v1 = vld [vmem:[#allocation3 + $0x610] sm:$0xff]  ;;  %v1486_v4 = vpack.c.bf16 %v825_v60, %v823_v59 }
  0x79   :  { %1289 = vmatprep.subr.bf16.mxu1 %v1288_v35  ;;  %568 = vmatmul.mubr.f32.gmra.mrb[2].mxu0 %v1790_v17  ;;  %v817_v35 = vld [vmem:[#allocation5 + $0x70] sm:$0xff]  ;;  %v242_v45 = vld [vmem:[#allocation3 + $0x598] sm:$0xff]  ;;  %v1480_v46 = vpack.c.bf16 %v822_v39, %v820_v37 }
  0x7a   :  { %573 = vmatprep.mubr.f32.mxu0 %v1795_v21  ;;  %1471 = vmatpush1.bf16.msra.mxu0 %v1470_v13  ;;  %v1478_v43 = vpack.c.bf16 %v817_v35, %v815_v33  ;;  %v250_v49 = vld [vmem:[#allocation3 + $0x5d8] sm:$0xff]  ;;  %v265_v3 = vld [vmem:[#allocation3 + $0x650] sm:$0xff] }
  0x7b   :  { %1473 = vmatprep.subr.bf16.mxu0 %v1472_v16  ;;  %v826_v51 = vld [vmem:[#allocation5 + $0xb8] sm:$0xff]  ;;  %v1316_v56 = vpack.c.bf16 %v250_v49, %v242_v45  ;;  %v273_v15 = vld [vmem:[#allocation3 + $0x690] sm:$0xff] }
  0x7c   :  { %1291 = vmatpush1.bf16.msra.mxu1 %v1290_v41  ;;  %v225_v41 = vld [vmem:[#allocation3 + $0x510] sm:$0xff]  ;;  %v258_v57 = vld [vmem:[#allocation3 + $0x618] sm:$0xff]  ;;  %v1484_v58 = vpack.c.bf16 %v826_v51, %v824_v50 }
  0x7d   :  { %1293 = vmatprep.subr.bf16.mxu1 %v1292_v42  ;;  %574 = vmatmul.mubr.f32.gmra.mrb[4].mxu0 %v1802_v26  ;;  %v233_v42 = vld [vmem:[#allocation3 + $0x550] sm:$0xff]  ;;  %v830_v63 = vld [vmem:[#allocation5 + $0xd8] sm:$0xff] }
  0x7e   :  { %579 = vmatprep.mubr.f32.mxu0 %v1807_v30  ;;  %1475 = vmatpush1.bf16.msra.mxu0 %v1474_v28  ;;  %v1314_v52 = vpack.c.bf16 %v233_v42, %v225_v41  ;;  %v274_v6 = vld [vmem:[#allocation3 + $0x698] sm:$0xff]  ;;  %v1488_v7 = vpack.c.bf16 %v830_v63, %v828_v62  ;;  %v281_v19 = vld [vmem:[#allocation3 + $0x6d0] sm:$0xff] }
  0x7f   :  { %1477 = vmatprep.subr.bf16.mxu0 %v1476_v32  ;;  %v282_v11 = vld [vmem:[#allocation3 + $0x6d8] sm:$0xff]  ;;  %v833_v23 = vld [vmem:[#allocation5 + $0xf0] sm:$0xff]  ;;  %v1326_v27 = vpack.c.bf16 %v281_v19, %v273_v15 }
  0x80   :  { %1295 = vmatpush1.bf16.msra.mxu1 %v1294_v47  ;;  %v819_v47 = vld [vmem:[#allocation5 + $0x80] sm:$0xff]  ;;  %v834_v13 = vld [vmem:[#allocation5 + $0xf8] sm:$0xff]  ;;  %v1324_v18 = vpack.c.bf16 %v282_v11, %v274_v6  ;;  %v1494_v28 = vpack.c.bf16 %v833_v23, %v831_v22  ;;  %v289_v31 = vld [vmem:[#allocation3 + $0x710] sm:$0xff] }
  0x81   :  { %1297 = vmatprep.subr.bf16.mxu1 %v1296_v48  ;;  %580 = vmatmul.mubr.f32.gmra.mrb[6].mxu0 %v1814_v34  ;;  %v821_v48 = vld [vmem:[#allocation5 + $0x90] sm:$0xff]  ;;  %v1492_v20 = vpack.c.bf16 %v834_v13, %v832_v12  ;;  %v298_v25 = vld [vmem:[#allocation3 + $0x758] sm:$0xff] }
  0x82   :  { %1479 = vmatpush1.bf16.msra.mxu0 %v1478_v43  ;;  %v297_v32 = vld [vmem:[#allocation3 + $0x750] sm:$0xff]  ;;  %v306_v33 = vld [vmem:[#allocation3 + $0x798] sm:$0xff] }
  0x83   :  { %1481 = vmatprep.subr.bf16.mxu0 %v1480_v46  ;;  %v314_v35 = vld [vmem:[#allocation3 + $0x7d8] sm:$0xff]  ;;  %v1330_v36 = vpack.c.bf16 %v297_v32, %v289_v31  ;;  %v305_v39 = vld [vmem:[#allocation3 + $0x790] sm:$0xff] }
  0x84   :  { %1299 = vmatpush1.bf16.msra.mxu1 %v1298_v55  ;;  %v1482_v55 = vpack.c.bf16 %v821_v48, %v819_v47  ;;  %v1332_v37 = vpack.c.bf16 %v314_v35, %v306_v33  ;;  %v70_v41 = vld [vmem:[#allocation3 + $0x38] sm:$0xff]  ;;  %v69_v45 = vld [vmem:[#allocation3 + $0x30] sm:$0xff]  ;;  %v840_v35 = vld [vmem:[#allocation5 + $0x128] sm:$0xff] }
  0x85   :  { %1301 = vmatprep.subr.bf16.mxu1 %v1300_v61  ;;  %v266_v61 = vld [vmem:[#allocation3 + $0x658] sm:$0xff]  ;;  %v77_v46 = vld [vmem:[#allocation3 + $0x70] sm:$0xff] }
  0x86   :  { %1483 = vmatpush1.bf16.msra.mxu0 %v1482_v55  ;;  %v1320_v5 = vpack.c.bf16 %v266_v61, %v258_v57  ;;  %v78_v42 = vld [vmem:[#allocation3 + $0x78] sm:$0xff]  ;;  %v1402_v49 = vpack.c.bf16 %v77_v46, %v69_v45  ;;  %v85_v51 = vld [vmem:[#allocation3 + $0xb0] sm:$0xff] }
  0x87   :  { %1485 = vmatprep.subr.bf16.mxu0 %v1484_v58  ;;  %v86_v47 = vld [vmem:[#allocation3 + $0xb8] sm:$0xff]  ;;  %v101_v57 = vld [vmem:[#allocation3 + $0x130] sm:$0xff] }
  0x88   :  { %1303 = vmatpush1.bf16.msra.mxu1 %v1302_v10  ;;  %v829_v10 = vld [vmem:[#allocation5 + $0xd0] sm:$0xff]  ;;  %v94_v48 = vld [vmem:[#allocation3 + $0xf8] sm:$0xff] }
  0x89   :  { %1305 = vmatprep.subr.bf16.mxu1 %v1304_v14  ;;  %v1322_v14 = vpack.c.bf16 %v265_v3, %v257_v1  ;;  %v1490_v16 = vpack.c.bf16 %v829_v10, %v827_v8  ;;  %v1404_v50 = vpack.c.bf16 %v94_v48, %v86_v47  ;;  %v102_v53 = vld [vmem:[#allocation3 + $0x138] sm:$0xff]  ;;  %v109_v58 = vld [vmem:[#allocation3 + $0x170] sm:$0xff]  ;;  %v844_v48 = vld [vmem:[#allocation5 + $0x148] sm:$0xff] }
  0x8a   :  { %1487 = vmatpush1.bf16.msra.mxu0 %v1486_v4  ;;  %v110_v54 = vld [vmem:[#allocation3 + $0x178] sm:$0xff]  ;;  %v1410_v61 = vpack.c.bf16 %v109_v58, %v101_v57  ;;  %v117_v63 = vld [vmem:[#allocation3 + $0x1b0] sm:$0xff] }
  0x8b   :  { %1489 = vmatprep.subr.bf16.mxu0 %v1488_v7  ;;  %v118_v59 = vld [vmem:[#allocation3 + $0x1b8] sm:$0xff]  ;;  %v133_v6 = vld [vmem:[#allocation3 + $0x230] sm:$0xff] }
  0x8c   :  { %1307 = vmatpush1.bf16.msra.mxu1 %v1306_v24  ;;  %v290_v24 = vld [vmem:[#allocation3 + $0x718] sm:$0xff]  ;;  %v141_v7 = vld [vmem:[#allocation3 + $0x270] sm:$0xff] }
  0x8d   :  { %1309 = vmatprep.subr.bf16.mxu1 %v1308_v29  ;;  %v1328_v29 = vpack.c.bf16 %v298_v25, %v290_v24  ;;  %v126_v60 = vld [vmem:[#allocation3 + $0x1f8] sm:$0xff]  ;;  %v1418_v11 = vpack.c.bf16 %v141_v7, %v133_v6  ;;  %v149_v13 = vld [vmem:[#allocation3 + $0x2b0] sm:$0xff] }
  0x8e   :  { %1491 = vmatpush1.bf16.msra.mxu0 %v1490_v16  ;;  %v1412_v62 = vpack.c.bf16 %v126_v60, %v118_v59  ;;  %v134_v1 = vld [vmem:[#allocation3 + $0x238] sm:$0xff]  ;;  %v165_v19 = vld [vmem:[#allocation3 + $0x330] sm:$0xff]  ;;  %v848_v60 = vld [vmem:[#allocation5 + $0x168] sm:$0xff] }
  0x8f   :  { %1493 = vmatprep.subr.bf16.mxu0 %v1492_v20  ;;  %v142_v3 = vld [vmem:[#allocation3 + $0x278] sm:$0xff]  ;;  %v836_v20 = vld [vmem:[#allocation5 + $0x108] sm:$0xff]  ;;  %v173_v24 = vld [vmem:[#allocation3 + $0x370] sm:$0xff] }
  0x90   :  { %1311 = vmatpush1.bf16.msra.mxu1 %v1310_v40  ;;  %v313_v40 = vld [vmem:[#allocation3 + $0x7d0] sm:$0xff]  ;;  %v150_v8 = vld [vmem:[#allocation3 + $0x2b8] sm:$0xff]  ;;  %v1426_v32 = vpack.c.bf16 %v173_v24, %v165_v19  ;;  %v856_v24 = vld [vmem:[#allocation5 + $0x1a8] sm:$0xff] }
  0x91   :  { %1313 = vmatprep.subr.bf16.mxu1 %v1312_v44  ;;  %v1334_v43 = vpack.c.bf16 %v313_v40, %v305_v39  ;;  %v1400_v44 = vpack.c.bf16 %v78_v42, %v70_v41  ;;  %v158_v10 = vld [vmem:[#allocation3 + $0x2f8] sm:$0xff]  ;;  %v181_v33 = vld [vmem:[#allocation3 + $0x3b0] sm:$0xff]  ;;  %v839_v41 = vld [vmem:[#allocation5 + $0x120] sm:$0xff] }
  0x92   :  { %1495 = vmatpush1.bf16.msra.mxu0 %v1494_v28  ;;  %v1420_v12 = vpack.c.bf16 %v158_v10, %v150_v8  ;;  %v166_v15 = vld [vmem:[#allocation3 + $0x338] sm:$0xff]  ;;  %v837_v28 = vld [vmem:[#allocation5 + $0x110] sm:$0xff]  ;;  %v852_v10 = vld [vmem:[#allocation5 + $0x188] sm:$0xff] }
  0x93   :  { %v174_v16 = vld [vmem:[#allocation3 + $0x378] sm:$0xff]  ;;  %v189_v39 = vld [vmem:[#allocation3 + $0x3f0] sm:$0xff] }
  0x94   :  { %1315 = vmatpush1.bf16.msra.mxu1 %v1314_v52  ;;  %v93_v52 = vld [vmem:[#allocation3 + $0xf0] sm:$0xff]  ;;  %v838_v22 = vld [vmem:[#allocation5 + $0x118] sm:$0xff]  ;;  %v1424_v23 = vpack.c.bf16 %v174_v16, %v166_v15  ;;  %v1430_v46 = vpack.c.bf16 %v189_v39, %v181_v33  ;;  %v851_v15 = vld [vmem:[#allocation5 + $0x180] sm:$0xff] }
  0x95   :  { %1317 = vmatprep.subr.bf16.mxu1 %v1316_v56  ;;  %v1406_v55 = vpack.c.bf16 %v93_v52, %v85_v51  ;;  %v1408_v56 = vpack.c.bf16 %v110_v54, %v102_v53  ;;  %v1496_v25 = vpack.c.bf16 %v838_v22, %v836_v20  ;;  %v190_v31 = vld [vmem:[#allocation3 + $0x3f8] sm:$0xff]  ;;  %v841_v42 = vld [vmem:[#allocation5 + $0x130] sm:$0xff]  ;;  %v843_v53 = vld [vmem:[#allocation5 + $0x140] sm:$0xff] }
  0x96   :  { %v1502_v45 = vpack.c.bf16 %v841_v42, %v839_v41  ;;  %v197_v47 = vld [vmem:[#allocation3 + $0x430] sm:$0xff]  ;;  %v254_v19 = vld [vmem:[#allocation3 + $0x5f8] sm:$0xff]  ;;  %v860_v39 = vld [vmem:[#allocation5 + $0x1c8] sm:$0xff] }
  0x97   :  { %1497 = vmatprep.subr.bf16.mxu0 %v1496_v25  ;;  %v205_v51 = vld [vmem:[#allocation3 + $0x470] sm:$0xff]  ;;  %v858_v25 = vld [vmem:[#allocation5 + $0x1b8] sm:$0xff] }
  0x98   :  { %1319 = vmatpush1.bf16.msra.mxu1 %v1318_v0  ;;  %v125_v0 = vld [vmem:[#allocation3 + $0x1f0] sm:$0xff]  ;;  %v1434_v58 = vpack.c.bf16 %v205_v51, %v197_v47  ;;  %v270_v33 = vld [vmem:[#allocation3 + $0x678] sm:$0xff]  ;;  %v864_v51 = vld [vmem:[#allocation5 + $0x1e8] sm:$0xff] }
  0x99   :  { %1321 = vmatprep.subr.bf16.mxu1 %v1320_v5  ;;  %v1414_v4 = vpack.c.bf16 %v125_v0, %v117_v63  ;;  %v1416_v5 = vpack.c.bf16 %v142_v3, %v134_v1  ;;  %v845_v54 = vld [vmem:[#allocation5 + $0x150] sm:$0xff]  ;;  %v847_v1 = vld [vmem:[#allocation5 + $0x160] sm:$0xff]  ;;  %v286_v47 = vld [vmem:[#allocation3 + $0x6f8] sm:$0xff] }
  0x9a   :  { %v1506_v57 = vpack.c.bf16 %v845_v54, %v843_v53  ;;  %v213_v59 = vld [vmem:[#allocation3 + $0x4b0] sm:$0xff] }
  0x9b   :  { %v221_v63 = vld [vmem:[#allocation3 + $0x4f0] sm:$0xff] }
  0x9c   :  { %1323 = vmatpush1.bf16.msra.mxu1 %v1322_v14  ;;  %v157_v14 = vld [vmem:[#allocation3 + $0x2f0] sm:$0xff]  ;;  %v1438_v7 = vpack.c.bf16 %v221_v63, %v213_v59  ;;  %v302_v59 = vld [vmem:[#allocation3 + $0x778] sm:$0xff] }
  0x9d   :  { %1325 = vmatprep.subr.bf16.mxu1 %v1324_v18  ;;  %v1422_v18 = vpack.c.bf16 %v157_v14, %v149_v13  ;;  %v849_v3 = vld [vmem:[#allocation5 + $0x170] sm:$0xff] }
  0x9e   :  { %v1510_v6 = vpack.c.bf16 %v849_v3, %v847_v1  ;;  %v229_v8 = vld [vmem:[#allocation3 + $0x530] sm:$0xff]  ;;  %v310_v1 = vld [vmem:[#allocation3 + $0x7b8] sm:$0xff] }
  0x9f   :  { %v237_v13 = vld [vmem:[#allocation3 + $0x570] sm:$0xff]  ;;  %v318_v3 = vld [vmem:[#allocation3 + $0x7f8] sm:$0xff] }
  0xa0   :  { %1327 = vmatpush1.bf16.msra.mxu1 %v1326_v27  ;;  %v835_v27 = vld [vmem:[#allocation5 + $0x100] sm:$0xff]  ;;  %v853_v16 = vld [vmem:[#allocation5 + $0x190] sm:$0xff]  ;;  %v1442_v22 = vpack.c.bf16 %v237_v13, %v229_v8 }
  0xa1   :  { %1329 = vmatprep.subr.bf16.mxu1 %v1328_v29  ;;  %v182_v29 = vld [vmem:[#allocation3 + $0x3b8] sm:$0xff]  ;;  %v1514_v20 = vpack.c.bf16 %v853_v16, %v851_v15  ;;  %v269_v42 = vld [vmem:[#allocation3 + $0x670] sm:$0xff] }
  0xa2   :  { %v285_v54 = vld [vmem:[#allocation3 + $0x6f0] sm:$0xff] }
  0xa3   :  { %v293_v63 = vld [vmem:[#allocation3 + $0x730] sm:$0xff] }
  0xa4   :  { %1331 = vmatpush1.bf16.msra.mxu1 %v1330_v36  ;;  %v842_v36 = vld [vmem:[#allocation5 + $0x138] sm:$0xff] }
  0xa5   :  { %1333 = vmatprep.subr.bf16.mxu1 %v1332_v37  ;;  %v1428_v37 = vpack.c.bf16 %v190_v31, %v182_v29  ;;  %v1500_v40 = vpack.c.bf16 %v842_v36, %v840_v35  ;;  %v1516_v29 = vpack.c.bf16 %v858_v25, %v856_v24  ;;  %v855_v31 = vld [vmem:[#allocation5 + $0x1a0] sm:$0xff] }
  0xa8   :  { %1335 = vmatpush1.bf16.msra.mxu1 %v1334_v43  ;;  %v198_v43 = vld [vmem:[#allocation3 + $0x438] sm:$0xff] }
  0xa9   :  { %1401 = vmatprep.subr.bf16.mxu1 %v1400_v44  ;;  %v206_v44 = vld [vmem:[#allocation3 + $0x478] sm:$0xff] }
  0xab   :  { %473 = vmatmul.mubr.f32.vlgmr.msra.gmra.mrb[8].mxu1 %v1778_v2 }
  0xac   :  { %1403 = vmatpush1.bf16.msra.mxu1 %v1402_v49  ;;  %478 = vmatprep.mubr.f32.mxu1 %v1783_v9  ;;  %v846_v49 = vld [vmem:[#allocation5 + $0x158] sm:$0xff] }
  0xad   :  { %1405 = vmatprep.subr.bf16.mxu1 %v1404_v50  ;;  %v1432_v50 = vpack.c.bf16 %v206_v44, %v198_v43  ;;  %v1504_v52 = vpack.c.bf16 %v846_v49, %v844_v48  ;;  %v859_v44 = vld [vmem:[#allocation5 + $0x1c0] sm:$0xff] }
  0xaf   :  { %479 = vmatmul.mubr.f32.gmra.mrb[10].mxu1 %v1790_v17 }
  0xb0   :  { %1407 = vmatpush1.bf16.msra.mxu1 %v1406_v55  ;;  %484 = vmatprep.mubr.f32.mxu1 %v1795_v21  ;;  %v214_v55 = vld [vmem:[#allocation3 + $0x4b8] sm:$0xff] }
  0xb1   :  { %1409 = vmatprep.subr.bf16.mxu1 %v1408_v56  ;;  %v222_v56 = vld [vmem:[#allocation3 + $0x4f8] sm:$0xff] }
  0xb3   :  { %485 = vmatmul.mubr.f32.gmra.mrb[12].mxu1 %v1802_v26 }
  0xb4   :  { %1411 = vmatpush1.bf16.msra.mxu1 %v1410_v61  ;;  %490 = vmatprep.mubr.f32.mxu1 %v1807_v30  ;;  %v850_v61 = vld [vmem:[#allocation5 + $0x178] sm:$0xff] }
  0xb5   :  { %1413 = vmatprep.subr.bf16.mxu1 %v1412_v62  ;;  %v1436_v62 = vpack.c.bf16 %v222_v56, %v214_v55  ;;  %v1508_v0 = vpack.c.bf16 %v850_v61, %v848_v60  ;;  %v863_v56 = vld [vmem:[#allocation5 + $0x1e0] sm:$0xff] }
  0xb7   :  { %491 = vmatmul.mubr.f32.gmra.mrb[14].mxu1 %v1814_v34 }
  0xb8   :  { %1415 = vmatpush1.bf16.msra.mxu1 %v1414_v4  ;;  %650 = vmatprep.mubr.f32.mxu1 %v1771_v38  ;;  %v1498_v38 = vpack.c.bf16 %v837_v28, %v835_v27  ;;  %v230_v4 = vld [vmem:[#allocation3 + $0x538] sm:$0xff]  ;;  %v253_v28 = vld [vmem:[#allocation3 + $0x5f0] sm:$0xff] }
  0xb9   :  { %1417 = vmatprep.subr.bf16.mxu1 %v1416_v5  ;;  %v238_v5 = vld [vmem:[#allocation3 + $0x578] sm:$0xff] }
  0xba   :  { %1499 = vmatpush1.bf16.msra.mxu0 %v1498_v38  ;;  %v857_v38 = vld [vmem:[#allocation5 + $0x1b0] sm:$0xff] }
  0xbb   :  { %1501 = vmatprep.subr.bf16.mxu0 %v1500_v40  ;;  %v1518_v35 = vpack.c.bf16 %v857_v38, %v855_v31  ;;  %v862_v40 = vld [vmem:[#allocation5 + $0x1d8] sm:$0xff] }
  0xbc   :  { %1419 = vmatpush1.bf16.msra.mxu1 %v1418_v11  ;;  %v854_v11 = vld [vmem:[#allocation5 + $0x198] sm:$0xff]  ;;  %v1520_v43 = vpack.c.bf16 %v862_v40, %v860_v39 }
  0xbd   :  { %1421 = vmatprep.subr.bf16.mxu1 %v1420_v12  ;;  %v1440_v12 = vpack.c.bf16 %v238_v5, %v230_v4  ;;  %v1512_v14 = vpack.c.bf16 %v854_v11, %v852_v10  ;;  %v1460_v5 = vpack.c.bf16 %v318_v3, %v310_v1  ;;  %v868_v10 = vld [vmem:[#allocation5 + $0x208] sm:$0xff]  ;;  %v870_v11 = vld [vmem:[#allocation5 + $0x218] sm:$0xff]  ;;  %v871_v3 = vld [vmem:[#allocation5 + $0x220] sm:$0xff] }
  0xbe   :  { %1503 = vmatpush1.bf16.msra.mxu0 %v1502_v45  ;;  %v861_v45 = vld [vmem:[#allocation5 + $0x1d0] sm:$0xff] }
  0xbf   :  { %1505 = vmatprep.subr.bf16.mxu0 %v1504_v52  ;;  %v1522_v48 = vpack.c.bf16 %v861_v45, %v859_v44  ;;  %v866_v52 = vld [vmem:[#allocation5 + $0x1f8] sm:$0xff] }
  0xc0   :  { %1423 = vmatpush1.bf16.msra.mxu1 %v1422_v18  ;;  %v246_v18 = vld [vmem:[#allocation3 + $0x5b8] sm:$0xff]  ;;  %v1524_v55 = vpack.c.bf16 %v866_v52, %v864_v51  ;;  %v867_v52 = vld [vmem:[#allocation5 + $0x200] sm:$0xff] }
  0xc1   :  { %1425 = vmatprep.subr.bf16.mxu1 %v1424_v23  ;;  %v245_v23 = vld [vmem:[#allocation3 + $0x5b0] sm:$0xff]  ;;  %v1444_v27 = vpack.c.bf16 %v254_v19, %v246_v18 }
  0xc2   :  { %1507 = vmatpush1.bf16.msra.mxu0 %v1506_v57  ;;  %v1446_v36 = vpack.c.bf16 %v253_v28, %v245_v23  ;;  %v865_v57 = vld [vmem:[#allocation5 + $0x1f0] sm:$0xff] }
  0xc3   :  { %1509 = vmatprep.subr.bf16.mxu0 %v1508_v0  ;;  %v1526_v60 = vpack.c.bf16 %v865_v57, %v863_v56  ;;  %v301_v0 = vld [vmem:[#allocation3 + $0x770] sm:$0xff]  ;;  %v872_v56 = vld [vmem:[#allocation5 + $0x228] sm:$0xff]  ;;  %v874_v57 = vld [vmem:[#allocation5 + $0x238] sm:$0xff] }
  0xc4   :  { %1427 = vmatpush1.bf16.msra.mxu1 %v1426_v32  ;;  %v262_v32 = vld [vmem:[#allocation3 + $0x638] sm:$0xff]  ;;  %v1458_v4 = vpack.c.bf16 %v301_v0, %v293_v63  ;;  %v1532_v1 = vpack.c.bf16 %v874_v57, %v872_v56 }
  0xc5   :  { %1429 = vmatprep.subr.bf16.mxu1 %v1428_v37  ;;  %v261_v37 = vld [vmem:[#allocation3 + $0x630] sm:$0xff]  ;;  %v1448_v41 = vpack.c.bf16 %v270_v33, %v262_v32  ;;  %v902_v56 = vld [vmem:[#allocation5 + $0x318] sm:$0xff] }
  0xc6   :  { %1511 = vmatpush1.bf16.msra.mxu0 %v1510_v6  ;;  %v1450_v49 = vpack.c.bf16 %v269_v42, %v261_v37  ;;  %v309_v6 = vld [vmem:[#allocation3 + $0x7b0] sm:$0xff] }
  0xc7   :  { %1513 = vmatprep.subr.bf16.mxu0 %v1512_v14 }
  0xc8   :  { %1431 = vmatpush1.bf16.msra.mxu1 %v1430_v46  ;;  %v278_v46 = vld [vmem:[#allocation3 + $0x6b8] sm:$0xff] }
  0xc9   :  { %1433 = vmatprep.subr.bf16.mxu1 %v1432_v50  ;;  %v277_v50 = vld [vmem:[#allocation3 + $0x6b0] sm:$0xff]  ;;  %v1452_v53 = vpack.c.bf16 %v286_v47, %v278_v46 }
  0xca   :  { %1515 = vmatpush1.bf16.msra.mxu0 %v1514_v20  ;;  %v1454_v61 = vpack.c.bf16 %v285_v54, %v277_v50 }
  0xcb   :  { %1517 = vmatprep.subr.bf16.mxu0 %v1516_v29 }
  0xcc   :  { %1435 = vmatpush1.bf16.msra.mxu1 %v1434_v58  ;;  %v294_v58 = vld [vmem:[#allocation3 + $0x738] sm:$0xff] }
  0xcd   :  { %1437 = vmatprep.subr.bf16.mxu1 %v1436_v62  ;;  %v1456_v62 = vpack.c.bf16 %v302_v59, %v294_v58 }
  0xce   :  { %1519 = vmatpush1.bf16.msra.mxu0 %v1518_v35 }
  0xcf   :  { %1521 = vmatprep.subr.bf16.mxu0 %v1520_v43 }
  0xd0   :  { %1439 = vmatpush1.bf16.msra.mxu1 %v1438_v7  ;;  %v317_v7 = vld [vmem:[#allocation3 + $0x7f0] sm:$0xff] }
  0xd1   :  { %1441 = vmatprep.subr.bf16.mxu1 %v1440_v12  ;;  %v1462_v8 = vpack.c.bf16 %v317_v7, %v309_v6  ;;  %v1528_v12 = vpack.c.bf16 %v870_v11, %v868_v10  ;;  %v876_v6 = vld [vmem:[#allocation5 + $0x248] sm:$0xff]  ;;  %v878_v7 = vld [vmem:[#allocation5 + $0x258] sm:$0xff] }
  0xd2   :  { %1523 = vmatpush1.bf16.msra.mxu0 %v1522_v48 }
  0xd3   :  { %1525 = vmatprep.subr.bf16.mxu0 %v1524_v55 }
  0xd4   :  { %1443 = vmatpush1.bf16.msra.mxu1 %v1442_v22 }
  0xd5   :  { %1445 = vmatprep.subr.bf16.mxu1 %v1444_v27 }
  0xd6   :  { %1527 = vmatpush1.bf16.msra.mxu0 %v1526_v60 }
  0xd7   :  { %1529 = vmatprep.subr.bf16.mxu0 %v1528_v12 }
  0xd8   :  { %1447 = vmatpush1.bf16.msra.mxu1 %v1446_v36 }
  0xd9   :  { %1449 = vmatprep.subr.bf16.mxu1 %v1448_v41 }
  0xdc   :  { %1451 = vmatpush1.bf16.msra.mxu1 %v1450_v49 }
  0xdd   :  { %1453 = vmatprep.subr.bf16.mxu1 %v1452_v53  ;;  %v869_v53 = vld [vmem:[#allocation5 + $0x210] sm:$0xff] }
  0xe0   :  { %1455 = vmatpush1.bf16.msra.mxu1 %v1454_v61 }
  0xe1   :  { %1457 = vmatprep.subr.bf16.mxu1 %v1456_v62  ;;  %v1530_v62 = vpack.c.bf16 %v869_v53, %v867_v52  ;;  %v895_v53 = vld [vmem:[#allocation5 + $0x2e0] sm:$0xff] }
  0xe4   :  { %1459 = vmatpush1.bf16.msra.mxu1 %v1458_v4  ;;  %v873_v4 = vld [vmem:[#allocation5 + $0x230] sm:$0xff] }
  0xe5   :  { %1461 = vmatprep.subr.bf16.mxu1 %v1460_v5  ;;  %v1534_v12 = vpack.c.bf16 %v873_v4, %v871_v3  ;;  %v905_v3 = vld [vmem:[#allocation5 + $0x330] sm:$0xff] }
  0xe8   :  { %1463 = vmatpush1.bf16.msra.mxu1 %v1462_v8 }
  0xeb   :  { %651 = vmatmul.mubr.f32.vlgmr.msra.gmra.mrb[16].mxu1 %v1778_v2 }
  0xec   :  { %656 = vmatprep.mubr.f32.mxu1 %v1783_v9 }
  0xef   :  { %657 = vmatmul.mubr.f32.gmra.mrb[18].mxu1 %v1790_v17 }
  0xf0   :  { %662 = vmatprep.mubr.f32.mxu1 %v1795_v21 }
  0xf3   :  { %663 = vmatmul.mubr.f32.gmra.mrb[20].mxu1 %v1802_v26 }
  0xf4   :  { %668 = vmatprep.mubr.f32.mxu1 %v1807_v30 }
  0xf7   :  { %669 = vmatmul.mubr.f32.gmra.mrb[22].mxu1 %v1814_v34 }
 0x13e   :  { %v385_v13 = vpop.f32.mrb[0].mxu1 }
 0x13f   :  { %v1192_v14 = vmul.f32 -1.442695, %v385_v13  ;;  %v387_v15 = vpop.f32.mrb[1].mxu1 }
 0x140   :  { %v1193_v2 = vmul.f32 -1.442695, %v387_v15 }
 0x141   :  { %1606 = vpow2.f32 %v1192_v14 }
 0x142   :  { %1608 = vpow2.f32 %v1193_v2  ;;  %v391_v9 = vpop.f32.mrb[2].mxu1  ;;  %v875_v2 = vld [vmem:[#allocation5 + $0x240] sm:$0xff] }
 0x143   :  { %v1196_v17 = vmul.f32 -1.442695, %v391_v9  ;;  %v1840_v16 = vpop.f32.mrb[3].mxu1 }
 0x144   :  { %v1197_v21 = vmul.f32 -1.442695, %v1840_v16 }
 0x145   :  { %1610 = vpow2.f32 %v1196_v17 }
 0x146   :  { %1612 = vpow2.f32 %v1197_v21  ;;  %v1843_v26 = vpop.f32.mrb[4].mxu1  ;;  %v882_v21 = vld [vmem:[#allocation5 + $0x278] sm:$0xff] }
 0x147   :  { %v1200_v30 = vmul.f32 -1.442695, %v1843_v26  ;;  %v1846_v34 = vpop.f32.mrb[5].mxu1 }
 0x148   :  { %v563_v18 = vpop.f32.mrb[0].mxu0  ;;  %v1201_v19 = vmul.f32 -1.442695, %v1846_v34 }
 0x149   :  { %1614 = vpow2.f32 %v1200_v30  ;;  %v565_v20 = vpop.f32.mrb[1].mxu0 }
 0x14a   :  { %1616 = vpow2.f32 %v1201_v19  ;;  %v1849_v22 = vpop.f32.mrb[6].mxu1 }
 0x14b   :  { %v1607_v23 = vpop.eup %1606  ;;  %v1204_v24 = vmul.f32 -1.442695, %v1849_v22  ;;  %v1852_v25 = vpop.f32.mrb[7].mxu1 }
 0x14c   :  { %v1609_v27 = vpop.eup %1608  ;;  %v723_v28 = vadd.f32 1.0, %v1607_v23  ;;  %v1205_v29 = vmul.f32 -1.442695, %v1852_v25  ;;  %v569_v31 = vpop.f32.mrb[2].mxu0 }
 0x14d   :  { %v724_v38 = vadd.f32 1.0, %v1609_v27  ;;  %1618 = vpow2.f32 %v1204_v24  ;;  %v571_v32 = vpop.f32.mrb[3].mxu0  ;;  %v881_v27 = vld [vmem:[#allocation5 + $0x270] sm:$0xff] }
 0x14e   :  { %1620 = vrcp.f32 %v723_v28  ;;  %v884_v28 = vld [vmem:[#allocation5 + $0x288] sm:$0xff] }
 0x14f   :  { %v1611_v33 = vpop.eup %1610  ;;  %1622 = vrcp.f32 %v724_v38 }
 0x150   :  { %v1613_v35 = vpop.eup %1612  ;;  %v727_v36 = vadd.f32 1.0, %v1611_v33  ;;  %1624 = vpow2.f32 %v1205_v29  ;;  %v575_v37 = vpop.f32.mrb[4].mxu0  ;;  %v886_v29 = vld [vmem:[#allocation5 + $0x298] sm:$0xff] }
 0x151   :  { %v728_v39 = vadd.f32 1.0, %v1613_v35  ;;  %v577_v40 = vpop.f32.mrb[5].mxu0  ;;  %v1544_v33 = vpack.c.bf16 %v886_v29, %v884_v28  ;;  %v883_v35 = vld [vmem:[#allocation5 + $0x280] sm:$0xff]  ;;  %v920_v29 = vld [vmem:[#allocation5 + $0x3a8] sm:$0xff] }
 0x152   :  { %1626 = vrcp.f32 %v727_v36  ;;  %v885_v36 = vld [vmem:[#allocation5 + $0x290] sm:$0xff] }
 0x153   :  { %v1615_v41 = vpop.eup %1614  ;;  %1628 = vrcp.f32 %v728_v39  ;;  %v890_v39 = vld [vmem:[#allocation5 + $0x2b8] sm:$0xff] }
 0x154   :  { %v1617_v42 = vpop.eup %1616  ;;  %v731_v43 = vadd.f32 1.0, %v1615_v41  ;;  %v1855_v44 = vpop.f32.mrb[6].mxu0 }
 0x155   :  { %v732_v45 = vadd.f32 1.0, %v1617_v42  ;;  %v1857_v46 = vpop.f32.mrb[7].mxu0  ;;  %v887_v42 = vld [vmem:[#allocation5 + $0x2a0] sm:$0xff] }
 0x156   :  { %1630 = vrcp.f32 %v731_v43  ;;  %v889_v43 = vld [vmem:[#allocation5 + $0x2b0] sm:$0xff] }
 0x157   :  { %v1619_v47 = vpop.eup %1618  ;;  %1632 = vrcp.f32 %v732_v45  ;;  %v1550_v45 = vpack.c.bf16 %v889_v43, %v887_v42  ;;  %v928_v42 = vld [vmem:[#allocation5 + $0x3e8] sm:$0xff]  ;;  %v930_v43 = vld [vmem:[#allocation5 + $0x3f8] sm:$0xff] }
 0x158   :  { %v1621_v48 = vpop.eup %1620  ;;  %v735_v49 = vadd.f32 1.0, %v1619_v47 }
 0x159   :  { %v1623_v50 = vpop.eup %1622  ;;  %v771_v51 = vmul.f32 %v1621_v48, %v385_v13  ;;  %v891_v48 = vld [vmem:[#allocation5 + $0x2c0] sm:$0xff] }
 0x15a   :  { %v1625_v54 = vpop.eup %1624  ;;  %v772_v55 = vmul.f32 %v1623_v50, %v387_v15  ;;  %1634 = vrcp.f32 %v735_v49  ;;  %v1536_v15 = vpack.c.bf16 %v878_v7, %v876_v6  ;;  %v893_v49 = vld [vmem:[#allocation5 + $0x2d0] sm:$0xff]  ;;  %v896_v50 = vld [vmem:[#allocation5 + $0x2e8] sm:$0xff]  ;;  %v910_v6 = vld [vmem:[#allocation5 + $0x358] sm:$0xff] }
 0x15b   :  { %v787_v58 = vmul.f32 %v771_v51, %v563_v18  ;;  %v736_v59 = vadd.f32 1.0, %v1625_v54  ;;  %v1554_v51 = vpack.c.bf16 %v893_v49, %v891_v48  ;;  %v897_v54 = vld [vmem:[#allocation5 + $0x2f0] sm:$0xff] }
 0x15c   :  { %v1627_v60 = vpop.eup %1626  ;;  %v788_v61 = vmul.f32 %v772_v55, %v565_v20  ;;  %v900_v55 = vld [vmem:[#allocation5 + $0x308] sm:$0xff]  ;;  %v1558_v57 = vpack.c.bf16 %v897_v54, %v895_v53 }
 0x15d   :  { %v1629_v63 = vpop.eup %1628  ;;  %v775_v0 = vmul.f32 %v1627_v60, %v391_v9  ;;  %1636 = vrcp.f32 %v736_v59  ;;  %v877_v9 = vld [vmem:[#allocation5 + $0x250] sm:$0xff]  ;;  %v899_v59 = vld [vmem:[#allocation5 + $0x300] sm:$0xff] }
 0x15e   :  { %v776_v5 = vmul.f32 %v1629_v63, %v1840_v16  ;;  %995 = vmatprep.mubr.f32.mxu0 %v788_v61  ;;  %v880_v16 = vld [vmem:[#allocation5 + $0x268] sm:$0xff]  ;;  %v1538_v20 = vpack.c.bf16 %v877_v9, %v875_v2  ;;  %v901_v60 = vld [vmem:[#allocation5 + $0x310] sm:$0xff] }
 0x15f   :  { %996 = vmatmul.mubr.f32.vlgmr.msra.gmra.mrb[8].mxu0 %v787_v58  ;;  %v791_v8 = vmul.f32 %v775_v0, %v569_v31  ;;  %v1540_v24 = vpack.c.bf16 %v882_v21, %v880_v16  ;;  %v1560_v58 = vpack.c.bf16 %v902_v56, %v900_v55  ;;  %v904_v61 = vld [vmem:[#allocation5 + $0x328] sm:$0xff]  ;;  %v1562_v63 = vpack.c.bf16 %v901_v60, %v899_v59  ;;  %v911_v16 = vld [vmem:[#allocation5 + $0x360] sm:$0xff]  ;;  %v913_v21 = vld [vmem:[#allocation5 + $0x370] sm:$0xff] }
 0x160   :  { %v1631_v10 = vpop.eup %1630  ;;  %v792_v11 = vmul.f32 %v776_v5, %v571_v32  ;;  %1531 = vmatpush1.bf16.msra.mxu0 %v1530_v62  ;;  %v906_v62 = vld [vmem:[#allocation5 + $0x338] sm:$0xff]  ;;  %v908_v5 = vld [vmem:[#allocation5 + $0x348] sm:$0xff] }
 0x161   :  { %v1633_v13 = vpop.eup %1632  ;;  %v779_v14 = vmul.f32 %v1631_v10, %v1843_v26  ;;  %1533 = vmatprep.subr.bf16.mxu0 %v1532_v1  ;;  %v879_v26 = vld [vmem:[#allocation5 + $0x260] sm:$0xff]  ;;  %v1564_v0 = vpack.c.bf16 %v906_v62, %v904_v61  ;;  %v1568_v10 = vpack.c.bf16 %v910_v6, %v908_v5 }
 0x162   :  { %v780_v17 = vmul.f32 %v1633_v13, %v1846_v34  ;;  %1001 = vmatprep.mubr.f32.mxu0 %v792_v11  ;;  %v1542_v32 = vpack.c.bf16 %v881_v27, %v879_v26  ;;  %v903_v1 = vld [vmem:[#allocation5 + $0x320] sm:$0xff]  ;;  %v917_v27 = vld [vmem:[#allocation5 + $0x390] sm:$0xff] }
 0x163   :  { %v795_v30 = vmul.f32 %v779_v14, %v575_v37  ;;  %1002 = vmatmul.mubr.f32.gmra.mrb[10].mxu0 %v791_v8  ;;  %v888_v37 = vld [vmem:[#allocation5 + $0x2a8] sm:$0xff]  ;;  %v1566_v8 = vpack.c.bf16 %v905_v3, %v903_v1  ;;  %v907_v11 = vld [vmem:[#allocation5 + $0x340] sm:$0xff] }
 0x164   :  { %v1635_v18 = vpop.eup %1634  ;;  %v796_v19 = vmul.f32 %v780_v17, %v577_v40  ;;  %1535 = vmatpush1.bf16.msra.mxu0 %v1534_v12  ;;  %v1546_v40 = vpack.c.bf16 %v885_v36, %v883_v35  ;;  %v1548_v41 = vpack.c.bf16 %v890_v39, %v888_v37  ;;  %v909_v12 = vld [vmem:[#allocation5 + $0x350] sm:$0xff]  ;;  %v912_v14 = vld [vmem:[#allocation5 + $0x368] sm:$0xff]  ;;  %v915_v26 = vld [vmem:[#allocation5 + $0x380] sm:$0xff] }
 0x165   :  { %v783_v23 = vmul.f32 %v1635_v18, %v1849_v22  ;;  %1537 = vmatprep.subr.bf16.mxu0 %v1536_v15  ;;  %v914_v15 = vld [vmem:[#allocation5 + $0x378] sm:$0xff]  ;;  %v1570_v9 = vpack.c.bf16 %v909_v12, %v907_v11  ;;  %v916_v18 = vld [vmem:[#allocation5 + $0x388] sm:$0xff]  ;;  %v921_v35 = vld [vmem:[#allocation5 + $0x3b0] sm:$0xff] }
 0x166   :  { %1007 = vmatprep.mubr.f32.mxu0 %v796_v19  ;;  %v1572_v17 = vpack.c.bf16 %v914_v15, %v912_v14  ;;  %v918_v19 = vld [vmem:[#allocation5 + $0x398] sm:$0xff]  ;;  %v924_v36 = vld [vmem:[#allocation5 + $0x3c8] sm:$0xff] }
 0x167   :  { %v1637_v31 = vpop.eup %1636  ;;  %v799_v34 = vmul.f32 %v783_v23, %v1855_v44  ;;  %1008 = vmatmul.mubr.f32.gmra.mrb[12].mxu0 %v795_v30  ;;  %v892_v44 = vld [vmem:[#allocation5 + $0x2c8] sm:$0xff]  ;;  %v1574_v23 = vpack.c.bf16 %v913_v21, %v911_v16 }
 0x168   :  { %v784_v38 = vmul.f32 %v1637_v31, %v1852_v25  ;;  %1539 = vmatpush1.bf16.msra.mxu0 %v1538_v20  ;;  %v894_v25 = vld [vmem:[#allocation5 + $0x2d8] sm:$0xff] }
 0x169   :  { %1541 = vmatprep.subr.bf16.mxu0 %v1540_v24  ;;  %v1552_v47 = vpack.c.bf16 %v894_v25, %v892_v44  ;;  %v1576_v24 = vpack.c.bf16 %v918_v19, %v916_v18  ;;  %v922_v31 = vld [vmem:[#allocation5 + $0x3b8] sm:$0xff]  ;;  %v1588_v25 = vpack.c.bf16 %v930_v43, %v928_v42 }
 0x16a   :  { %v800_v22 = vmul.f32 %v784_v38, %v1857_v46  ;;  %v898_v46 = vld [vmem:[#allocation5 + $0x2f8] sm:$0xff]  ;;  %v1578_v38 = vpack.c.bf16 %v917_v27, %v915_v26 }
 0x16b   :  { %v1556_v52 = vpack.c.bf16 %v898_v46, %v896_v50 }
 0x16c   :  { %1013 = vmatprep.mubr.f32.mxu0 %v800_v22  ;;  %1543 = vmatpush1.bf16.msra.mxu0 %v1542_v32  ;;  %v1580_v32 = vpack.c.bf16 %v922_v31, %v920_v29  ;;  %v926_v22 = vld [vmem:[#allocation5 + $0x3d8] sm:$0xff] }
 0x16d   :  { %1014 = vmatmul.mubr.f32.gmra.mrb[14].mxu0 %v799_v34  ;;  %1545 = vmatprep.subr.bf16.mxu0 %v1544_v33  ;;  %v919_v33 = vld [vmem:[#allocation5 + $0x3a0] sm:$0xff]  ;;  %v1584_v39 = vpack.c.bf16 %v926_v22, %v924_v36 }
 0x16e   :  { %v1582_v37 = vpack.c.bf16 %v921_v35, %v919_v33 }
 0x170   :  { %1547 = vmatpush1.bf16.msra.mxu0 %v1546_v40  ;;  %v923_v40 = vld [vmem:[#allocation5 + $0x3c0] sm:$0xff] }
 0x171   :  { %1549 = vmatprep.subr.bf16.mxu0 %v1548_v41  ;;  %v925_v41 = vld [vmem:[#allocation5 + $0x3d0] sm:$0xff] }
 0x172   :  { %v1586_v44 = vpack.c.bf16 %v925_v41, %v923_v40 }
 0x174   :  { %1551 = vmatpush1.bf16.msra.mxu0 %v1550_v45  ;;  %v927_v45 = vld [vmem:[#allocation5 + $0x3e0] sm:$0xff] }
 0x175   :  { %1553 = vmatprep.subr.bf16.mxu0 %v1552_v47  ;;  %v929_v47 = vld [vmem:[#allocation5 + $0x3f0] sm:$0xff] }
 0x176   :  { %v1590_v48 = vpack.c.bf16 %v929_v47, %v927_v45 }
 0x178   :  { %1555 = vmatpush1.bf16.msra.mxu0 %v1554_v51 }
 0x179   :  { %1557 = vmatprep.subr.bf16.mxu0 %v1556_v52 }
 0x17c   :  { %1559 = vmatpush1.bf16.msra.mxu0 %v1558_v57 }
 0x17d   :  { %1561 = vmatprep.subr.bf16.mxu0 %v1560_v58 }
 0x17e   :  { %v1866_v4 = vpop.f32.mrb[8].mxu1 }
 0x17f   :  { %v1868_v7 = vpop.f32.mrb[9].mxu1  ;;  %v1194_v49 = vmul.f32 -1.442695, %v1866_v4 }
 0x180   :  { %1563 = vmatpush1.bf16.msra.mxu0 %v1562_v63  ;;  %v1195_v50 = vmul.f32 -1.442695, %v1868_v7 }
 0x181   :  { %1565 = vmatprep.subr.bf16.mxu0 %v1564_v0  ;;  %1638 = vpow2.f32 %v1194_v49 }
 0x182   :  { %v1870_v13 = vpop.f32.mrb[10].mxu1  ;;  %1640 = vpow2.f32 %v1195_v50 }
 0x183   :  { %v1872_v2 = vpop.f32.mrb[11].mxu1  ;;  %v1198_v46 = vmul.f32 -1.442695, %v1870_v13 }
 0x184   :  { %1567 = vmatpush1.bf16.msra.mxu0 %v1566_v8  ;;  %v1199_v51 = vmul.f32 -1.442695, %v1872_v2 }
 0x185   :  { %1569 = vmatprep.subr.bf16.mxu0 %v1568_v10  ;;  %1642 = vpow2.f32 %v1198_v46 }
 0x186   :  { %v1874_v30 = vpop.f32.mrb[12].mxu1  ;;  %1644 = vpow2.f32 %v1199_v51 }
 0x187   :  { %v1876_v20 = vpop.f32.mrb[13].mxu1  ;;  %v1202_v52 = vmul.f32 -1.442695, %v1874_v30 }
 0x188   :  { %1571 = vmatpush1.bf16.msra.mxu0 %v1570_v9  ;;  %v1203_v53 = vmul.f32 -1.442695, %v1876_v20 }
 0x189   :  { %1573 = vmatprep.subr.bf16.mxu0 %v1572_v17  ;;  %1646 = vpow2.f32 %v1202_v52 }
 0x18a   :  { %v1878_v28 = vpop.f32.mrb[14].mxu1  ;;  %1648 = vpow2.f32 %v1203_v53 }
 0x18b   :  { %v1880_v34 = vpop.f32.mrb[15].mxu1  ;;  %v1206_v54 = vmul.f32 -1.442695, %v1878_v28  ;;  %v1639_v56 = vpop.eup %1638 }
 0x18c   :  { %1575 = vmatpush1.bf16.msra.mxu0 %v1574_v23  ;;  %v1207_v55 = vmul.f32 -1.442695, %v1880_v34  ;;  %v1641_v57 = vpop.eup %1640  ;;  %v725_v58 = vadd.f32 1.0, %v1639_v56 }
 0x18d   :  { %1577 = vmatprep.subr.bf16.mxu0 %v1576_v24  ;;  %1650 = vpow2.f32 %v1206_v54  ;;  %v726_v60 = vadd.f32 1.0, %v1641_v57 }
 0x18e   :  { %1652 = vpow2.f32 %v1207_v55 }
 0x18f   :  { %v1643_v59 = vpop.eup %1642  ;;  %1654 = vrcp.f32 %v725_v58 }
 0x190   :  { %1579 = vmatpush1.bf16.msra.mxu0 %v1578_v38  ;;  %v1645_v61 = vpop.eup %1644  ;;  %v729_v62 = vadd.f32 1.0, %v1643_v59  ;;  %1656 = vrcp.f32 %v726_v60 }
 0x191   :  { %1581 = vmatprep.subr.bf16.mxu0 %v1580_v32  ;;  %v730_v0 = vadd.f32 1.0, %v1645_v61 }
 0x192   :  { %1658 = vrcp.f32 %v729_v62 }
 0x193   :  { %v1647_v63 = vpop.eup %1646  ;;  %1660 = vrcp.f32 %v730_v0 }
 0x194   :  { %1583 = vmatpush1.bf16.msra.mxu0 %v1582_v37  ;;  %v1649_v1 = vpop.eup %1648  ;;  %v733_v3 = vadd.f32 1.0, %v1647_v63 }
 0x195   :  { %1585 = vmatprep.subr.bf16.mxu0 %v1584_v39  ;;  %v734_v6 = vadd.f32 1.0, %v1649_v1 }
 0x196   :  { %1662 = vrcp.f32 %v733_v3 }
 0x197   :  { %v1651_v5 = vpop.eup %1650  ;;  %1664 = vrcp.f32 %v734_v6 }
 0x198   :  { %1587 = vmatpush1.bf16.msra.mxu0 %v1586_v44  ;;  %v1653_v8 = vpop.eup %1652  ;;  %v737_v10 = vadd.f32 1.0, %v1651_v5 }
 0x199   :  { %1589 = vmatprep.subr.bf16.mxu0 %v1588_v25  ;;  %v738_v11 = vadd.f32 1.0, %v1653_v8  ;;  %v1655_v12 = vpop.eup %1654 }
 0x19a   :  { %v1657_v14 = vpop.eup %1656  ;;  %1666 = vrcp.f32 %v737_v10  ;;  %v773_v15 = vmul.f32 %v1655_v12, %v1866_v4 }
 0x19b   :  { %1668 = vrcp.f32 %v738_v11  ;;  %v774_v17 = vmul.f32 %v1657_v14, %v1868_v7 }
 0x19c   :  { %1591 = vmatpush1.bf16.msra.mxu0 %v1590_v48  ;;  %v1659_v9 = vpop.eup %1658 }
 0x19d   :  { %v1661_v21 = vpop.eup %1660  ;;  %v777_v24 = vmul.f32 %v1659_v9, %v1870_v13 }
 0x19e   :  { %v778_v27 = vmul.f32 %v1661_v21, %v1872_v2 }
 0x1a0   :  { %v1663_v26 = vpop.eup %1662 }
 0x1a1   :  { %v1665_v31 = vpop.eup %1664  ;;  %v781_v33 = vmul.f32 %v1663_v26, %v1874_v30 }
 0x1a2   :  { %v782_v35 = vmul.f32 %v1665_v31, %v1876_v20 }
 0x1a4   :  { %v1667_v7 = vpop.eup %1666 }
 0x1a5   :  { %v1669_v22 = vpop.eup %1668  ;;  %v785_v2 = vmul.f32 %v1667_v7, %v1878_v28 }
 0x1a6   :  { %v786_v40 = vmul.f32 %v1669_v22, %v1880_v34 }
 0x1be   :  { %v652_v16 = vpop.f32.mrb[16].mxu1 }
 0x1bf   :  { %v789_v18 = vmul.f32 %v773_v15, %v652_v16  ;;  %v654_v19 = vpop.f32.mrb[17].mxu1 }
 0x1c0   :  { %v790_v23 = vmul.f32 %v774_v17, %v654_v19 }
 0x1c2   :  { %v658_v29 = vpop.f32.mrb[18].mxu1  ;;  %1084 = vmatprep.mubr.f32.mxu0 %v790_v23 }
 0x1c3   :  { %v793_v38 = vmul.f32 %v777_v24, %v658_v29  ;;  %v660_v32 = vpop.f32.mrb[19].mxu1  ;;  %1085 = vmatmul.mubr.f32.vlgmr.msra.gmra.mrb[8].mxu0 %v789_v18 }
 0x1c4   :  { %v794_v4 = vmul.f32 %v778_v27, %v660_v32 }
 0x1c6   :  { %v664_v36 = vpop.f32.mrb[20].mxu1  ;;  %1090 = vmatprep.mubr.f32.mxu0 %v794_v4 }
 0x1c7   :  { %v797_v37 = vmul.f32 %v781_v33, %v664_v36  ;;  %v666_v13 = vpop.f32.mrb[21].mxu1  ;;  %1091 = vmatmul.mubr.f32.gmra.mrb[10].mxu0 %v793_v38 }
 0x1c8   :  { %v798_v39 = vmul.f32 %v782_v35, %v666_v13 }
 0x1ca   :  { %v670_v41 = vpop.f32.mrb[22].mxu1  ;;  %1096 = vmatprep.mubr.f32.mxu0 %v798_v39 }
 0x1cb   :  { %v801_v42 = vmul.f32 %v785_v2, %v670_v41  ;;  %v672_v43 = vpop.f32.mrb[23].mxu1  ;;  %1097 = vmatmul.mubr.f32.gmra.mrb[12].mxu0 %v797_v37 }
 0x1cc   :  { %v802_v30 = vmul.f32 %v786_v40, %v672_v43 }
 0x1ce   :  { %1102 = vmatprep.mubr.f32.mxu0 %v802_v30 }
 0x1cf   :  { %1103 = vmatmul.mubr.f32.gmra.mrb[14].mxu0 %v801_v42 }
 0x296   :  { %v1086_v20 = vpop.f32.mrb[8].mxu0 }
 0x297   :  { %1112 = vst [vmem:[%s1925_s3] sm:$0xff] %v1086_v20  ;;  %v1088_v44 = vpop.f32.mrb[9].mxu0 }
 0x298   :  { %1113 = vst [vmem:[%s1925_s3 + $0x8] sm:$0xff] %v1088_v44 }
 0x29a   :  { %v1092_v28 = vpop.f32.mrb[10].mxu0 }
 0x29b   :  { %1114 = vst [vmem:[%s1925_s3 + $0x10] sm:$0xff] %v1092_v28  ;;  %v1094_v34 = vpop.f32.mrb[11].mxu0 }
 0x29c   :  { %1115 = vst [vmem:[%s1925_s3 + $0x18] sm:$0xff] %v1094_v34 }
 0x29e   :  { %v1098_v25 = vpop.f32.mrb[12].mxu0 }
 0x29f   :  { %1116 = vst [vmem:[%s1925_s3 + $0x20] sm:$0xff] %v1098_v25  ;;  %v1100_v45 = vpop.f32.mrb[13].mxu0 }
 0x2a0   :  { %1117 = vst [vmem:[%s1925_s3 + $0x28] sm:$0xff] %v1100_v45 }
 0x2a2   :  { %v1104_v47 = vpop.f32.mrb[14].mxu0 }
 0x2a3   :  { %1118 = vst [vmem:[%s1925_s3 + $0x30] sm:$0xff] %v1104_v47  ;;  %v1106_v48 = vpop.f32.mrb[15].mxu0 }
 0x2a4   :  { %1119 = vst [vmem:[%s1925_s3 + $0x38] sm:$0xff] %v1106_v48 }
 0x2a5   :  { %1190 = vsyncpa [#allocation4], 1 }
 0x2a6   :  { %1191 = vsyncpa [#allocation6], 1 }

</bundles_post_ra>
